<compile_context>
chip_gen: v7x
topology: tpu7x:2x2x1
jax: 0.10.0
libtpu: 0.0.40
codegen_flags: <defaults>
</compile_context>

<pallas_src>
import math
import functools

import jax
import jax.numpy as jnp
from jax.experimental import pallas as pl
from jax.experimental.pallas import tpu as pltpu


def _cdiv(a, b):
    return (a + b - 1) // b


def _round_up(n, m):
    return _cdiv(n, m) * m


def _apply_act(h, act, approx_gelu):
    if act == "gelu":
        if approx_gelu:
            return jax.nn.gelu(h, approximate=True)
        return h * 0.5 * (1.0 + jax.lax.erf(h * jnp.float32(1.0 / math.sqrt(2.0))))
    if act == "relu":
        return jnp.maximum(h, 0.0)
    if act == "swish":
        return h * jax.nn.sigmoid(h)
    if act == "tanh":
        return jnp.tanh(h)
    if act == "sigmoid":
        return jax.nn.sigmoid(h)
    raise ValueError(f"unsupported activation: {act}")


def _ffn_kernel(x_ref, w1_ref, b1_ref, w2_ref, b2_ref, gamma_ref, beta_ref,
                o_ref, acc_ref, *, ln_eps, hidden_act, approx_gelu, mm_dtype):
    ti = pl.program_id(1)
    n_ti = pl.num_programs(1)

    @pl.when(ti == 0)
    def _():
        acc_ref[...] = jnp.zeros_like(acc_ref)

    x = x_ref[...]                                            # (rt, H), native dtype
    x_mm = x if mm_dtype is None else x.astype(mm_dtype)

    # dense_1 partial (this TI chunk): MXU matmul, f32 accumulation.
    h = jnp.dot(x_mm, w1_ref[...], preferred_element_type=jnp.float32)
    h = h + b1_ref[...].astype(jnp.float32)                   # (rt, TI) f32

    # Activation is elementwise over the intermediate -> exact when applied per chunk.
    h = _apply_act(h, hidden_act, approx_gelu)

    # dense_2 partial: accumulate into the resident f32 scratch.
    acc_ref[...] += jnp.dot(h.astype(w2_ref.dtype), w2_ref[...],
                            preferred_element_type=jnp.float32)

    # Dropout: inference mode -> identity.
    # TODO(synk): training-mode dropout (stochastic masking via pltpu.prng_*) not implemented.

    @pl.when(ti == n_ti - 1)
    def _():
        y = acc_ref[...] + b2_ref[...].astype(jnp.float32) + x.astype(jnp.float32)
        mean = jnp.mean(y, axis=-1, keepdims=True)
        var = jnp.mean(jnp.square(y - mean), axis=-1, keepdims=True)
        y = (y - mean) * jax.lax.rsqrt(var + jnp.float32(ln_eps))
        y = y * gamma_ref[...].astype(jnp.float32) + beta_ref[...].astype(jnp.float32)
        o_ref[...] = y.astype(o_ref.dtype)


def _vmem_capacity_bytes():
    try:
        cap = getattr(pltpu.get_tpu_info(), "vmem_capacity_bytes", None)
        if cap:
            return int(cap)
    except Exception:
        pass
    return 64 * 1024 * 1024   # conservative fallback = v7x per-TensorCore VMEM


def _vmem_estimate(rt, ti, H, act_bytes, w_bytes):
    b = 0
    b += 2 * rt * H * act_bytes               # x tile (double-buffered)
    b += 2 * rt * H * act_bytes               # out tile (double-buffered)
    b += rt * H * 4                           # f32 accumulator scratch
    b += 2 * H * ti * w_bytes                 # W1 tile (counted double-buffered)
    b += 2 * ti * H * w_bytes                 # W2 tile (counted double-buffered)
    b += 2 * ti * 4 + 3 * 2 * H * 4           # b1 / b2 / gamma / beta
    b += rt * ti * 4                          # activation intermediate (f32)
    b += rt * ti * max(w_bytes, act_bytes)    # its recast for dense_2
    b += rt * H * 4                           # y / LayerNorm temp
    return int(b * 1.15)                      # headroom


def _choose_inner_tile(I, H, w_bytes, budget, requested=None):
    if requested is not None:
        ti = int(requested)
        if 0 < ti <= I and I % ti == 0 and (ti == I or ti % 128 == 0):
            return ti
    if I % 128 != 0:
        return I                              # can't tile cleanly; keep full I resident
    ti = I
    while ti >= 128:
        if I % ti == 0 and 4 * H * ti * w_bytes <= budget // 3:
            return ti
        ti -= 128
    return 128


def _choose_row_tile(n_rows, ti, H, act_bytes, w_bytes, budget):
    n_pad8 = _round_up(n_rows, 8)
    if n_pad8 >= 16:
        # Prefer >= 2 row tiles so the "parallel" axis can feed both TCs (v7x megacore).
        max_rt = min(n_pad8, max(8, _round_up(_cdiv(n_rows, 2), 8)))
    else:
        max_rt = n_pad8
    for cand in (1024, 512, 256, 128, 64, 32, 16, 8):
        if cand <= max_rt and _vmem_estimate(cand, ti, H, act_bytes, w_bytes) <= budget:
            return cand
    return 8


def feedforward_pallas(x, w1, b1, w2, b2, gamma, beta, *, ln_eps,
                       hidden_act="gelu", approx_gelu=False,
                       use_bf16_matmul=False, inner_tile=None):
    """x: (..., H). w1: (H, I), b1: (I,), w2: (I, H), b2: (H,), gamma/beta: (H,)."""
    orig_shape = x.shape
    H = orig_shape[-1]
    I = w1.shape[1]
    x2d = x.reshape(-1, H)
    N = x2d.shape[0]

    # Optional bf16 MXU path (biggest compute lever for f32 models; changes numerics).
    mm_dtype = None
    w1c, w2c = w1, w2
    if use_bf16_matmul:
        w1c = w1.astype(jnp.bfloat16)
        w2c = w2.astype(jnp.bfloat16)
        if x.dtype != jnp.bfloat16:
            mm_dtype = jnp.bfloat16

    act_bytes = jnp.dtype(x.dtype).itemsize
    w_bytes = jnp.dtype(w1c.dtype).itemsize

    capacity = _vmem_capacity_bytes()
    budget = max(32 * 1024 * 1024, int(capacity * 0.85))   # ~54 MiB v7x, ~109 MiB v5e/v6e

    ti = _choose_inner_tile(I, H, w_bytes, budget, inner_tile)
    rt = _choose_row_tile(N, ti, H, act_bytes, w_bytes, budget)
    n_i = I // ti

    n_pad = _round_up(N, rt)
    if n_pad != N:
        x2d = jnp.pad(x2d, ((0, n_pad - N), (0, 0)))
    n_row_tiles = n_pad // rt

    b1_2d = b1.reshape(1, I)
    b2_2d = b2.reshape(1, H)
    gamma_2d = gamma.reshape(1, H)
    beta_2d = beta.reshape(1, H)

    kernel = functools.partial(_ffn_kernel, ln_eps=ln_eps, hidden_act=hidden_act,
                               approx_gelu=approx_gelu, mm_dtype=mm_dtype)

    cost = pl.CostEstimate(
        flops=4 * n_pad * H * I,                         # two GEMMs: 2*N*H*I each
        transcendentals=n_pad * I,
        bytes_accessed=(2 * n_pad * H * act_bytes
                        + n_row_tiles * 2 * H * I * w_bytes
                        + n_row_tiles * (2 * I + 3 * H) * 4),
    )
    vmem_limit = int(budget)

    def build(single_buffer):
        def spec(shape, index_map, const_index):
            if single_buffer and const_index:
                return pl.BlockSpec(shape, index_map, pipeline_mode=pl.Buffered(1))
            return pl.BlockSpec(shape, index_map)

        stream_const = (n_i == 1)   # W1/b1/W2 index-invariant only if a single I tile
        in_specs = [
            pl.BlockSpec((rt, H), lambda i, k: (i, 0)),          # x tile
            spec((H, ti), lambda i, k: (0, k), stream_const),    # W1 tile
            spec((1, ti), lambda i, k: (0, k), stream_const),    # b1 tile
            spec((ti, H), lambda i, k: (k, 0), stream_const),    # W2 tile
            spec((1, H), lambda i, k: (0, 0), True),             # b2
            spec((1, H), lambda i, k: (0, 0), True),             # gamma
            spec((1, H), lambda i, k: (0, 0), True),             # beta
        ]
        return pl.pallas_call(
            kernel,
            out_shape=jax.ShapeDtypeStruct((n_pad, H), x.dtype),
            grid_spec=pltpu.PrefetchScalarGridSpec(
                num_scalar_prefetch=0,
                grid=(n_row_tiles, n_i),
                in_specs=in_specs,
                out_specs=pl.BlockSpec((rt, H), lambda i, k: (i, 0)),
                scratch_shapes=[pltpu.VMEM((rt, H), jnp.float32)],
            ),
            compiler_params=pltpu.CompilerParams(
                dimension_semantics=("parallel", "arbitrary"),
                vmem_limit_bytes=vmem_limit,
            ),
            cost_estimate=cost,
        )

    def run(single_buffer):
        out = build(single_buffer)(x2d, w1c, b1_2d, w2c, b2_2d, gamma_2d, beta_2d)
        return jax.block_until_ready(out)

    try:
        out = run(True)
    except Exception:
        # Installed Pallas rejected pl.Buffered(1) on index-invariant inputs;
        # fall back to default double-buffering (correct, slightly more VMEM).
        out = run(False)

    if n_pad != N:
        out = out[:N]
    return out.reshape(orig_shape)


def _reference(x, w1, b1, w2, b2, gamma, beta, ln_eps):
    xf = x.astype(jnp.float32)
    h = xf @ w1.astype(jnp.float32) + b1
    h = h * 0.5 * (1.0 + jax.lax.erf(h / jnp.float32(math.sqrt(2.0))))
    h = h @ w2.astype(jnp.float32) + b2
    y = h + xf
    mean = jnp.mean(y, axis=-1, keepdims=True)
    var = jnp.mean(jnp.square(y - mean), axis=-1, keepdims=True)
    return ((y - mean) * jax.lax.rsqrt(var + ln_eps) * gamma + beta).astype(x.dtype)


if __name__ == "__main__":
    # Lane-dense feature dims (multiples of 128) so stores are unmasked and the MXU
    # is actually exercised; still small.
    hidden_size = 128
    inner_size = 256
    batch, seq = 2, 8
    ln_eps = 1e-12

    key = jax.random.PRNGKey(0)
    kx, k1, k2, k3, k4 = jax.random.split(key, 5)

    x = jax.random.normal(kx, (batch, seq, hidden_size), dtype=jnp.float32)

    # PyTorch nn.Linear init: uniform(-1/sqrt(fan_in), 1/sqrt(fan_in)); weights are
    # passed transposed as (in, out) so the kernel computes x @ W + b.
    lim1 = 1.0 / math.sqrt(hidden_size)
    lim2 = 1.0 / math.sqrt(inner_size)
    w1 = jax.random.uniform(k1, (hidden_size, inner_size), jnp.float32, -lim1, lim1)
    b1 = jax.random.uniform(k2, (inner_size,), jnp.float32, -lim1, lim1)
    w2 = jax.random.uniform(k3, (inner_size, hidden_size), jnp.float32, -lim2, lim2)
    b2 = jax.random.uniform(k4, (hidden_size,), jnp.float32, -lim2, lim2)
    gamma = jnp.ones((hidden_size,), jnp.float32)
    beta = jnp.zeros((hidden_size,), jnp.float32)

    ref = _reference(x, w1, b1, w2, b2, gamma, beta, ln_eps)

    # 1) Default path (single I tile, auto row tile).
    out = feedforward_pallas(x, w1, b1, w2, b2, gamma, beta, ln_eps=ln_eps)
    out = jax.block_until_ready(out)
    assert out.shape == x.shape
    assert jnp.allclose(out, ref, atol=2e-5, rtol=2e-5)

    # 2) Exercise the inner-dim reduction axis (2 I-tiles) and the row-padding path.
    x2 = jax.random.normal(kx, (3, 5, hidden_size), dtype=jnp.float32)
    out2 = jax.block_until_ready(
        feedforward_pallas(x2, w1, b1, w2, b2, gamma, beta, ln_eps=ln_eps,
                           inner_tile=128))
    ref2 = _reference(x2, w1, b1, w2, b2, gamma, beta, ln_eps)
    assert jnp.allclose(out2, ref2, atol=2e-5, rtol=2e-5)

    print("KERNEL_OK")
</pallas_src>

<mosaic_0001>
module attributes {stable_mosaic.version = 11 : i64} {
  func.func @_ffn_kernel(%arg0: i32, %arg1: i32, %arg2: memref<8x128xf32, #tpu.memory_space<vmem>>, %arg3: memref<128x256xf32, #tpu.memory_space<vmem>>, %arg4: memref<1x256xf32, #tpu.memory_space<vmem>>, %arg5: memref<256x128xf32, #tpu.memory_space<vmem>>, %arg6: memref<1x128xf32, #tpu.memory_space<vmem>>, %arg7: memref<1x128xf32, #tpu.memory_space<vmem>>, %arg8: memref<1x128xf32, #tpu.memory_space<vmem>>, %arg9: memref<8x128xf32, #tpu.memory_space<vmem>>, %arg10: memref<8x128xf32, #tpu.memory_space<vmem>>) attributes {dimension_semantics = [#tpu.dimension_semantics<parallel>, #tpu.dimension_semantics<arbitrary>], iteration_bounds = array<i64: 2, 1>, scalar_prefetch = 0 : i64, scratch_operands = 1 : i64, tpu.core_type = #tpu.core_type<tc>, window_params = [{transform_indices = @transform_0, window_bounds = array<i64: 8, 128>}, {pipeline_mode = #tpu.pipeline_mode<synchronous>, transform_indices = @transform_1, window_bounds = array<i64: 128, 256>}, {pipeline_mode = #tpu.pipeline_mode<synchronous>, transform_indices = @transform_2, window_bounds = array<i64: 1, 256>}, {pipeline_mode = #tpu.pipeline_mode<synchronous>, transform_indices = @transform_3, window_bounds = array<i64: 256, 128>}, {pipeline_mode = #tpu.pipeline_mode<synchronous>, transform_indices = @transform_4, window_bounds = array<i64: 1, 128>}, {pipeline_mode = #tpu.pipeline_mode<synchronous>, transform_indices = @transform_5, window_bounds = array<i64: 1, 128>}, {pipeline_mode = #tpu.pipeline_mode<synchronous>, transform_indices = @transform_6, window_bounds = array<i64: 1, 128>}, {transform_indices = @transform_7, window_bounds = array<i64: 8, 128>}]} {
    %c0_i32 = arith.constant 0 : i32
    %0 = arith.cmpi eq, %arg1, %c0_i32 : i32
    %1 = arith.extui %0 : i1 to i32
    %c0_i32_0 = arith.constant 0 : i32
    %2 = arith.cmpi ne, %1, %c0_i32_0 : i32
    scf.if %2 {
      %cst_18 = arith.constant 0.000000e+00 : f32
      %25 = vector.broadcast %cst_18 : f32 to vector<8x128xf32>
      %c0_19 = arith.constant 0 : index
      %c0_20 = arith.constant 0 : index
      %26 = vector.load %arg10[%c0_19, %c0_20] : memref<8x128xf32, #tpu.memory_space<vmem>>, vector<8x128xf32>
      tpu.vector_store %arg10[%c0_19, %c0_20], %25 {strides = array<i32>} : memref<8x128xf32, #tpu.memory_space<vmem>>, vector<8x128xf32>,
    } else {
    }
    %c0 = arith.constant 0 : index
    %c0_1 = arith.constant 0 : index
    %3 = vector.load %arg2[%c0, %c0_1] : memref<8x128xf32, #tpu.memory_space<vmem>>, vector<8x128xf32>
    %c0_2 = arith.constant 0 : index
    %c0_3 = arith.constant 0 : index
    %4 = vector.load %arg3[%c0_2, %c0_3] : memref<128x256xf32, #tpu.memory_space<vmem>>, vector<128x256xf32>
    %cst = arith.constant dense<0.000000e+00> : vector<8x256xf32>
    %5 = tpu.matmul %3, %4, %cst {dimension_numbers = #tpu.dot_dimension_numbers<[1], [0], [0], [1], [0, 0, 1, 1], [], []>} : vector<8x128xf32>, vector<128x256xf32>, vector<8x256xf32> -> vector<8x256xf32>
    %c0_4 = arith.constant 0 : index
    %c0_5 = arith.constant 0 : index
    %6 = vector.load %arg4[%c0_4, %c0_5] : memref<1x256xf32, #tpu.memory_space<vmem>>, vector<1x256xf32>
    %7 = vector.broadcast %6 : vector<1x256xf32> to vector<8x256xf32>
    %8 = arith.addf %5, %7 : vector<8x256xf32>
    %cst_6 = arith.constant 5.000000e-01 : f32
    %9 = vector.broadcast %cst_6 : f32 to vector<8x256xf32>
    %10 = arith.mulf %8, %9 : vector<8x256xf32>
    %cst_7 = arith.constant 0.707106769 : f32
    %11 = vector.broadcast %cst_7 : f32 to vector<8x256xf32>
    %12 = arith.mulf %8, %11 : vector<8x256xf32>
    %13 = math.erf %12 : vector<8x256xf32>
    %cst_8 = arith.constant 1.000000e+00 : f32
    %14 = vector.broadcast %cst_8 : f32 to vector<8x256xf32>
    %15 = arith.addf %14, %13 : vector<8x256xf32>
    %16 = arith.mulf %10, %15 : vector<8x256xf32>
    %c0_9 = arith.constant 0 : index
    %c0_10 = arith.constant 0 : index
    %17 = vector.load %arg10[%c0_9, %c0_10] : memref<8x128xf32, #tpu.memory_space<vmem>>, vector<8x128xf32>
    %c0_11 = arith.constant 0 : index
    %c0_12 = arith.constant 0 : index
    %18 = vector.load %arg5[%c0_11, %c0_12] : memref<256x128xf32, #tpu.memory_space<vmem>>, vector<256x128xf32>
    %cst_13 = arith.constant dense<0.000000e+00> : vector<8x128xf32>
    %19 = tpu.matmul %16, %18, %cst_13 {dimension_numbers = #tpu.dot_dimension_numbers<[1], [0], [0], [1], [0, 0, 1, 1], [], []>} : vector<8x256xf32>, vector<256x128xf32>, vector<8x128xf32> -> vector<8x128xf32>
    %20 = arith.addf %17, %19 : vector<8x128xf32>
    %c0_14 = arith.constant 0 : index
    %c0_15 = arith.constant 0 : index
    %21 = vector.load %arg10[%c0_14, %c0_15] : memref<8x128xf32, #tpu.memory_space<vmem>>, vector<8x128xf32>
    tpu.vector_store %arg10[%c0_14, %c0_15], %20 {strides = array<i32>} : memref<8x128xf32, #tpu.memory_space<vmem>>, vector<8x128xf32>,
    %c0_i32_16 = arith.constant 0 : i32
    %22 = arith.cmpi eq, %arg1, %c0_i32_16 : i32
    %23 = arith.extui %22 : i1 to i32
    %c0_i32_17 = arith.constant 0 : i32
    %24 = arith.cmpi ne, %23, %c0_i32_17 : i32
    scf.if %24 {
      %c0_18 = arith.constant 0 : index
      %c0_19 = arith.constant 0 : index
      %25 = vector.load %arg10[%c0_18, %c0_19] : memref<8x128xf32, #tpu.memory_space<vmem>>, vector<8x128xf32>
      %c0_20 = arith.constant 0 : index
      %c0_21 = arith.constant 0 : index
      %26 = vector.load %arg6[%c0_20, %c0_21] : memref<1x128xf32, #tpu.memory_space<vmem>>, vector<1x128xf32>
      %27 = vector.broadcast %26 : vector<1x128xf32> to vector<8x128xf32>
      %28 = arith.addf %25, %27 : vector<8x128xf32>
      %29 = arith.addf %28, %3 : vector<8x128xf32>
      %cst_22 = arith.constant dense<0.000000e+00> : vector<8xf32>
      %30 = vector.multi_reduction <add>, %29, %cst_22 [1] : vector<8x128xf32> to vector<8xf32>
      %31 = vector.shape_cast %30 : vector<8xf32> to vector<8x1xf32>
      %cst_23 = arith.constant 1.280000e+02 : f32
      %32 = vector.broadcast %cst_23 : f32 to vector<8x1xf32>
      %33 = arith.divf %31, %32 : vector<8x1xf32>
      %34 = vector.broadcast %33 : vector<8x1xf32> to vector<8x128xf32>
      %35 = arith.subf %29, %34 : vector<8x128xf32>
      %36 = arith.mulf %35, %35 : vector<8x128xf32>
      %cst_24 = arith.constant dense<0.000000e+00> : vector<8xf32>
      %37 = vector.multi_reduction <add>, %36, %cst_24 [1] : vector<8x128xf32> to vector<8xf32>
      %38 = vector.shape_cast %37 : vector<8xf32> to vector<8x1xf32>
      %cst_25 = arith.constant 1.280000e+02 : f32
      %39 = vector.broadcast %cst_25 : f32 to vector<8x1xf32>
      %40 = arith.divf %38, %39 : vector<8x1xf32>
      %41 = vector.broadcast %33 : vector<8x1xf32> to vector<8x128xf32>
      %42 = arith.subf %29, %41 : vector<8x128xf32>
      %cst_26 = arith.constant 9.99999996E-13 : f32
      %43 = vector.broadcast %cst_26 : f32 to vector<8x1xf32>
      %44 = arith.addf %40, %43 : vector<8x1xf32>
      %45 = math.rsqrt %44 : vector<8x1xf32>
      %46 = vector.broadcast %45 : vector<8x1xf32> to vector<8x128xf32>
      %47 = arith.mulf %42, %46 : vector<8x128xf32>
      %c0_27 = arith.constant 0 : index
      %c0_28 = arith.constant 0 : index
      %48 = vector.load %arg7[%c0_27, %c0_28] : memref<1x128xf32, #tpu.memory_space<vmem>>, vector<1x128xf32>
      %49 = vector.broadcast %48 : vector<1x128xf32> to vector<8x128xf32>
      %50 = arith.mulf %47, %49 : vector<8x128xf32>
      %c0_29 = arith.constant 0 : index
      %c0_30 = arith.constant 0 : index
      %51 = vector.load %arg8[%c0_29, %c0_30] : memref<1x128xf32, #tpu.memory_space<vmem>>, vector<1x128xf32>
      %52 = vector.broadcast %51 : vector<1x128xf32> to vector<8x128xf32>
      %53 = arith.addf %50, %52 : vector<8x128xf32>
      %c0_31 = arith.constant 0 : index
      %c0_32 = arith.constant 0 : index
      %54 = vector.load %arg9[%c0_31, %c0_32] : memref<8x128xf32, #tpu.memory_space<vmem>>, vector<8x128xf32>
      tpu.vector_store %arg9[%c0_31, %c0_32], %53 {strides = array<i32>} : memref<8x128xf32, #tpu.memory_space<vmem>>, vector<8x128xf32>,
    } else {
    }
    return
  }
  func.func @transform_0(%arg0: i32, %arg1: i32) -> (i32, i32) {
    %c0_i32 = arith.constant 0 : i32
    %c0_i32_0 = arith.constant 0 : i32
    return %arg0, %c0_i32 : i32, i32
  }
  func.func @transform_1(%arg0: i32, %arg1: i32) -> (i32, i32) {
    %c0_i32 = arith.constant 0 : i32
    %c0_i32_0 = arith.constant 0 : i32
    return %c0_i32, %arg1 : i32, i32
  }
  func.func @transform_2(%arg0: i32, %arg1: i32) -> (i32, i32) {
    %c0_i32 = arith.constant 0 : i32
    %c0_i32_0 = arith.constant 0 : i32
    return %c0_i32, %arg1 : i32, i32
  }
  func.func @transform_3(%arg0: i32, %arg1: i32) -> (i32, i32) {
    %c0_i32 = arith.constant 0 : i32
    %c0_i32_0 = arith.constant 0 : i32
    return %arg1, %c0_i32 : i32, i32
  }
  func.func @transform_4(%arg0: i32, %arg1: i32) -> (i32, i32) {
    %c0_i32 = arith.constant 0 : i32
    %c0_i32_0 = arith.constant 0 : i32
    %c0_i32_1 = arith.constant 0 : i32
    return %c0_i32, %c0_i32_0 : i32, i32
  }
  func.func @transform_5(%arg0: i32, %arg1: i32) -> (i32, i32) {
    %c0_i32 = arith.constant 0 : i32
    %c0_i32_0 = arith.constant 0 : i32
    %c0_i32_1 = arith.constant 0 : i32
    return %c0_i32, %c0_i32_0 : i32, i32
  }
  func.func @transform_6(%arg0: i32, %arg1: i32) -> (i32, i32) {
    %c0_i32 = arith.constant 0 : i32
    %c0_i32_0 = arith.constant 0 : i32
    %c0_i32_1 = arith.constant 0 : i32
    return %c0_i32, %c0_i32_0 : i32, i32
  }
  func.func @transform_7(%arg0: i32, %arg1: i32) -> (i32, i32) {
    %c0_i32 = arith.constant 0 : i32
    %c0_i32_0 = arith.constant 0 : i32
    return %arg0, %c0_i32 : i32, i32
  }
}

module attributes {stable_mosaic.version = 11 : i64} {
  func.func @_ffn_kernel(%arg0: i32, %arg1: i32, %arg2: memref<8x128xf32, #tpu.memory_space<vmem>>, %arg3: memref<128x256xf32, #tpu.memory_space<vmem>>, %arg4: memref<1x256xf32, #tpu.memory_space<vmem>>, %arg5: memref<256x128xf32, #tpu.memory_space<vmem>>, %arg6: memref<1x128xf32, #tpu.memory_space<vmem>>, %arg7: memref<1x128xf32, #tpu.memory_space<vmem>>, %arg8: memref<1x128xf32, #tpu.memory_space<vmem>>, %arg9: memref<8x128xf32, #tpu.memory_space<vmem>>, %arg10: memref<8x128xf32, #tpu.memory_space<vmem>>) attributes {dimension_semantics = [#tpu.dimension_semantics<parallel>, #tpu.dimension_semantics<arbitrary>], iteration_bounds = array<i64: 2, 1>, scalar_prefetch = 0 : i64, scratch_operands = 1 : i64, tpu.core_type = #tpu.core_type<tc>, window_params = [{transform_indices = @transform_0, window_bounds = array<i64: 8, 128>}, {transform_indices = @transform_1, window_bounds = array<i64: 128, 256>}, {transform_indices = @transform_2, window_bounds = array<i64: 1, 256>}, {transform_indices = @transform_3, window_bounds = array<i64: 256, 128>}, {pipeline_mode = #tpu.pipeline_mode<synchronous>, transform_indices = @transform_4, window_bounds = array<i64: 1, 128>}, {pipeline_mode = #tpu.pipeline_mode<synchronous>, transform_indices = @transform_5, window_bounds = array<i64: 1, 128>}, {pipeline_mode = #tpu.pipeline_mode<synchronous>, transform_indices = @transform_6, window_bounds = array<i64: 1, 128>}, {transform_indices = @transform_7, window_bounds = array<i64: 8, 128>}]} {
    %c0_i32 = arith.constant 0 : i32
    %0 = arith.cmpi eq, %arg1, %c0_i32 : i32
    %1 = arith.extui %0 : i1 to i32
    %c0_i32_0 = arith.constant 0 : i32
    %2 = arith.cmpi ne, %1, %c0_i32_0 : i32
    scf.if %2 {
      %cst_18 = arith.constant 0.000000e+00 : f32
      %25 = vector.broadcast %cst_18 : f32 to vector<8x128xf32>
      %c0_19 = arith.constant 0 : index
      %c0_20 = arith.constant 0 : index
      %26 = vector.load %arg10[%c0_19, %c0_20] : memref<8x128xf32, #tpu.memory_space<vmem>>, vector<8x128xf32>
      tpu.vector_store %arg10[%c0_19, %c0_20], %25 {strides = array<i32>} : memref<8x128xf32, #tpu.memory_space<vmem>>, vector<8x128xf32>,
    } else {
    }
    %c0 = arith.constant 0 : index
    %c0_1 = arith.constant 0 : index
    %3 = vector.load %arg2[%c0, %c0_1] : memref<8x128xf32, #tpu.memory_space<vmem>>, vector<8x128xf32>
    %c0_2 = arith.constant 0 : index
    %c0_3 = arith.constant 0 : index
    %4 = vector.load %arg3[%c0_2, %c0_3] : memref<128x256xf32, #tpu.memory_space<vmem>>, vector<128x256xf32>
    %cst = arith.constant dense<0.000000e+00> : vector<8x256xf32>
    %5 = tpu.matmul %3, %4, %cst {dimension_numbers = #tpu.dot_dimension_numbers<[1], [0], [0], [1], [0, 0, 1, 1], [], []>} : vector<8x128xf32>, vector<128x256xf32>, vector<8x256xf32> -> vector<8x256xf32>
    %c0_4 = arith.constant 0 : index
    %c0_5 = arith.constant 0 : index
    %6 = vector.load %arg4[%c0_4, %c0_5] : memref<1x256xf32, #tpu.memory_space<vmem>>, vector<1x256xf32>
    %7 = vector.broadcast %6 : vector<1x256xf32> to vector<8x256xf32>
    %8 = arith.addf %5, %7 : vector<8x256xf32>
    %cst_6 = arith.constant 5.000000e-01 : f32
    %9 = vector.broadcast %cst_6 : f32 to vector<8x256xf32>
    %10 = arith.mulf %8, %9 : vector<8x256xf32>
    %cst_7 = arith.constant 0.707106769 : f32
    %11 = vector.broadcast %cst_7 : f32 to vector<8x256xf32>
    %12 = arith.mulf %8, %11 : vector<8x256xf32>
    %13 = math.erf %12 : vector<8x256xf32>
    %cst_8 = arith.constant 1.000000e+00 : f32
    %14 = vector.broadcast %cst_8 : f32 to vector<8x256xf32>
    %15 = arith.addf %14, %13 : vector<8x256xf32>
    %16 = arith.mulf %10, %15 : vector<8x256xf32>
    %c0_9 = arith.constant 0 : index
    %c0_10 = arith.constant 0 : index
    %17 = vector.load %arg10[%c0_9, %c0_10] : memref<8x128xf32, #tpu.memory_space<vmem>>, vector<8x128xf32>
    %c0_11 = arith.constant 0 : index
    %c0_12 = arith.constant 0 : index
    %18 = vector.load %arg5[%c0_11, %c0_12] : memref<256x128xf32, #tpu.memory_space<vmem>>, vector<256x128xf32>
    %cst_13 = arith.constant dense<0.000000e+00> : vector<8x128xf32>
    %19 = tpu.matmul %16, %18, %cst_13 {dimension_numbers = #tpu.dot_dimension_numbers<[1], [0], [0], [1], [0, 0, 1, 1], [], []>} : vector<8x256xf32>, vector<256x128xf32>, vector<8x128xf32> -> vector<8x128xf32>
    %20 = arith.addf %17, %19 : vector<8x128xf32>
    %c0_14 = arith.constant 0 : index
    %c0_15 = arith.constant 0 : index
    %21 = vector.load %arg10[%c0_14, %c0_15] : memref<8x128xf32, #tpu.memory_space<vmem>>, vector<8x128xf32>
    tpu.vector_store %arg10[%c0_14, %c0_15], %20 {strides = array<i32>} : memref<8x128xf32, #tpu.memory_space<vmem>>, vector<8x128xf32>,
    %c0_i32_16 = arith.constant 0 : i32
    %22 = arith.cmpi eq, %arg1, %c0_i32_16 : i32
    %23 = arith.extui %22 : i1 to i32
    %c0_i32_17 = arith.constant 0 : i32
    %24 = arith.cmpi ne, %23, %c0_i32_17 : i32
    scf.if %24 {
      %c0_18 = arith.constant 0 : index
      %c0_19 = arith.constant 0 : index
      %25 = vector.load %arg10[%c0_18, %c0_19] : memref<8x128xf32, #tpu.memory_space<vmem>>, vector<8x128xf32>
      %c0_20 = arith.constant 0 : index
      %c0_21 = arith.constant 0 : index
      %26 = vector.load %arg6[%c0_20, %c0_21] : memref<1x128xf32, #tpu.memory_space<vmem>>, vector<1x128xf32>
      %27 = vector.broadcast %26 : vector<1x128xf32> to vector<8x128xf32>
      %28 = arith.addf %25, %27 : vector<8x128xf32>
      %29 = arith.addf %28, %3 : vector<8x128xf32>
      %cst_22 = arith.constant dense<0.000000e+00> : vector<8xf32>
      %30 = vector.multi_reduction <add>, %29, %cst_22 [1] : vector<8x128xf32> to vector<8xf32>
      %31 = vector.shape_cast %30 : vector<8xf32> to vector<8x1xf32>
      %cst_23 = arith.constant 1.280000e+02 : f32
      %32 = vector.broadcast %cst_23 : f32 to vector<8x1xf32>
      %33 = arith.divf %31, %32 : vector<8x1xf32>
      %34 = vector.broadcast %33 : vector<8x1xf32> to vector<8x128xf32>
      %35 = arith.subf %29, %34 : vector<8x128xf32>
      %36 = arith.mulf %35, %35 : vector<8x128xf32>
      %cst_24 = arith.constant dense<0.000000e+00> : vector<8xf32>
      %37 = vector.multi_reduction <add>, %36, %cst_24 [1] : vector<8x128xf32> to vector<8xf32>
      %38 = vector.shape_cast %37 : vector<8xf32> to vector<8x1xf32>
      %cst_25 = arith.constant 1.280000e+02 : f32
      %39 = vector.broadcast %cst_25 : f32 to vector<8x1xf32>
      %40 = arith.divf %38, %39 : vector<8x1xf32>
      %41 = vector.broadcast %33 : vector<8x1xf32> to vector<8x128xf32>
      %42 = arith.subf %29, %41 : vector<8x128xf32>
      %cst_26 = arith.constant 9.99999996E-13 : f32
      %43 = vector.broadcast %cst_26 : f32 to vector<8x1xf32>
      %44 = arith.addf %40, %43 : vector<8x1xf32>
      %45 = math.rsqrt %44 : vector<8x1xf32>
      %46 = vector.broadcast %45 : vector<8x1xf32> to vector<8x128xf32>
      %47 = arith.mulf %42, %46 : vector<8x128xf32>
      %c0_27 = arith.constant 0 : index
      %c0_28 = arith.constant 0 : index
      %48 = vector.load %arg7[%c0_27, %c0_28] : memref<1x128xf32, #tpu.memory_space<vmem>>, vector<1x128xf32>
      %49 = vector.broadcast %48 : vector<1x128xf32> to vector<8x128xf32>
      %50 = arith.mulf %47, %49 : vector<8x128xf32>
      %c0_29 = arith.constant 0 : index
      %c0_30 = arith.constant 0 : index
      %51 = vector.load %arg8[%c0_29, %c0_30] : memref<1x128xf32, #tpu.memory_space<vmem>>, vector<1x128xf32>
      %52 = vector.broadcast %51 : vector<1x128xf32> to vector<8x128xf32>
      %53 = arith.addf %50, %52 : vector<8x128xf32>
      %c0_31 = arith.constant 0 : index
      %c0_32 = arith.constant 0 : index
      %54 = vector.load %arg9[%c0_31, %c0_32] : memref<8x128xf32, #tpu.memory_space<vmem>>, vector<8x128xf32>
      tpu.vector_store %arg9[%c0_31, %c0_32], %53 {strides = array<i32>} : memref<8x128xf32, #tpu.memory_space<vmem>>, vector<8x128xf32>,
    } else {
    }
    return
  }
  func.func @transform_0(%arg0: i32, %arg1: i32) -> (i32, i32) {
    %c0_i32 = arith.constant 0 : i32
    %c0_i32_0 = arith.constant 0 : i32
    return %arg0, %c0_i32 : i32, i32
  }
  func.func @transform_1(%arg0: i32, %arg1: i32) -> (i32, i32) {
    %c0_i32 = arith.constant 0 : i32
    %c0_i32_0 = arith.constant 0 : i32
    return %c0_i32, %arg1 : i32, i32
  }
  func.func @transform_2(%arg0: i32, %arg1: i32) -> (i32, i32) {
    %c0_i32 = arith.constant 0 : i32
    %c0_i32_0 = arith.constant 0 : i32
    return %c0_i32, %arg1 : i32, i32
  }
  func.func @transform_3(%arg0: i32, %arg1: i32) -> (i32, i32) {
    %c0_i32 = arith.constant 0 : i32
    %c0_i32_0 = arith.constant 0 : i32
    return %arg1, %c0_i32 : i32, i32
  }
  func.func @transform_4(%arg0: i32, %arg1: i32) -> (i32, i32) {
    %c0_i32 = arith.constant 0 : i32
    %c0_i32_0 = arith.constant 0 : i32
    %c0_i32_1 = arith.constant 0 : i32
    return %c0_i32, %c0_i32_0 : i32, i32
  }
  func.func @transform_5(%arg0: i32, %arg1: i32) -> (i32, i32) {
    %c0_i32 = arith.constant 0 : i32
    %c0_i32_0 = arith.constant 0 : i32
    %c0_i32_1 = arith.constant 0 : i32
    return %c0_i32, %c0_i32_0 : i32, i32
  }
  func.func @transform_6(%arg0: i32, %arg1: i32) -> (i32, i32) {
    %c0_i32 = arith.constant 0 : i32
    %c0_i32_0 = arith.constant 0 : i32
    %c0_i32_1 = arith.constant 0 : i32
    return %c0_i32, %c0_i32_0 : i32, i32
  }
  func.func @transform_7(%arg0: i32, %arg1: i32) -> (i32, i32) {
    %c0_i32 = arith.constant 0 : i32
    %c0_i32_0 = arith.constant 0 : i32
    return %arg0, %c0_i32 : i32, i32
  }
}

</mosaic_0001>

<bundles_post_ra>
// kernel: tpu_custom_call.1
= control target key start
LH: loop header
LB: loop body
LE: loop exit
PB: predicated region body
PF: predicated region fallthrough
CT: control target
= control target key end

     0   :  { %12 = vsyncpa [#allocation4], 0  ;;  %s1487_s0 = inlined_call_operand.hbm [shape: f32[16,128], index: 0, kind: input, shape index: {}]   ;;  %s1488_s1 = inlined_call_operand.hbm [shape: f32[128,256], index: 1, kind: input, shape index: {}]   ;;  %s1489_s2 = inlined_call_operand.vmem [shape: f32[1,256], index: 2, kind: input, shape index: {}]   ;;  %s1490_s3 = inlined_call_operand.hbm [shape: f32[256,128], index: 3, kind: input, shape index: {}]   ;;  %s1491_s4 = inlined_call_operand.vmem [shape: f32[1,128], index: 4, kind: input, shape index: {}]   ;;  %s1492_s5 = inlined_call_operand.vmem [shape: f32[1,128], index: 5, kind: input, shape index: {}]   ;;  %s1493_s6 = inlined_call_operand.vmem [shape: f32[1,128], index: 6, kind: input, shape index: {}]   ;;  %s1494_s7 = inlined_call_operand.hbm [shape: f32[16,128], index: 7, kind: output, shape index: {}]  }
   0x1   :  { %14 = vsyncpa [#allocation4 + $0x1], 0 }
   0x2   :  { %15 = vsyncpa [#allocation7], 0 }
   0x3   :  { %16 = vsyncpa [#allocation5], 0 }
   0x4   :  { %18 = vsyncpa [#allocation5 + $0x1], 0  ;;  %s1214_s24 = smov 0   ;;  %s1216_s25 = smov 0  }
   0x5   :  { %s1218_s26 = smov 0   ;;  %s1220_s27 = smov 0  }
   0x6   :  { %s1222_s28 = smov 0   ;;  %s1224_s29 = smov 0  }
   0x7 LB: > { %1501 = sst [smem:[#allocation13_spill]] %s1143_s24  ;;  %s777_s30 = sadd.s32 4294967295, %s1163_s29   ;;  %s1163_s29 = sphi %s1224_s29, %s24_s29   ;;  %s1159_s28 = sphi %s1222_s28, %s1522_s28   ;;  %s1155_s27 = sphi %s1220_s27, %s1521_s27   ;;  %s1151_s26 = sphi %s1218_s26, %s1520_s26   ;;  %s1147_s25 = sphi %s1216_s25, %s1519_s25   ;;  %s1143_s24 = sphi %s1214_s24, %s1518_s24  }
   0x8   : > { %s778_s8 = sadd.s32 4294967294, %s1163_s29   ;;  %p56_p0 = scmp.ne.s32.totalorder %s1147_s25, %s1143_s24 }
   0x9   : > { %p1248_p1 = scmp.eq.s32.totalorder %s777_s30, 0  ;;  %p1252_p2 = scmp.eq.s32.totalorder %s777_s30, 1 }
   0xa   : > { %p227_p3 = scmp.eq.s32.totalorder %s778_s8, 1  ;;  %p779_p5 = scmp.ge.s32.totalorder %s1163_s29, 1 }
   0xb   : > { %s1502_s9 = scalar_select %p1248_p1, 1, 0 }
   0xc   : > { %p1258_p4 = por %p1248_p1, %p56_p0  ;;  %p1263_p6 = por %p227_p3, %p56_p0 }
   0xd   : > { %p234_p7 = scmp.lt.s32.totalorder %s1163_s29, 3  ;;  %s1165_s14 = smov [#allocation6]  }
   0xe   : > { %s1504_s11 = scalar_select %p1258_p4, 1, 0 }
   0xf   : > { %s1505_s12 = scalar_select %p1263_p6, 1, 0 }
  0x10   : > { %p1268_p8 = pnand %p779_p5, %p234_p7  ;;  %s249_s15 = sshll.u32 %s1165_s14, 4  ;;  %s1272_s15 = int_to_ptr.vmem [resolvable:$true] %s249_s15 }
  0x11   : > { %1506 = sst [smem:[#allocation14_spill]] %s1505_s12  ;;  %s1166_s17 = smov [#allocation8]  }
  0x12   : > { %p909_p9 = pneg %p1268_p8  ;;  %s273_s18 = sshll.u32 %s1166_s17, 4  ;;  %s1283_s18 = int_to_ptr.vmem [resolvable:$true] %s273_s18 }
  0x13   : > { %s991_s21 = scalar_lea.hbm %s1488_s1, 4096 }
  0x14   : > { %p1279_p11 = pnand %p909_p9, %p1248_p1  ;;  %p992_p12 = scmp.ne.s32.totalorder %s1488_s1, %s991_s21 }
  0x15   : > { %p998_p5 = scmp.lt.u32.totalorder %s991_s21, %s1488_s1 }
  0x16   : > { %p993_p13 = pneg %p1279_p11 }
  0x18   : > { %p994_p0 = pnand %p993_p13, %p992_p12 }
  0x1a   : > { %p995_p3 = pneg %p994_p0 }
  0x1c   : > { %p1000_p7 = pnand %p998_p5, %p995_p3 }
  0x1e   : > { %1003 = shalt.err (!%p1000_p7)
}
  0x1f   : > { %s1004_s14 = scalar_lea.vmem %s1272_s15, 4096  ;;  %p1012_p1 = scmp.lt.s32.totalorder %s1272_s15, %s1272_s15 }
  0x20   : > { %p1005_p9 = scmp.ne.s32.totalorder %s1272_s15, %s1004_s14  ;;  %p1013_p12 = scmp.lt.s32.totalorder %s1004_s14, %s1004_s14 }
  0x22   : > { %p1007_p10 = pnand %p1005_p9, %p993_p13  ;;  %p1014_p0 = por %p1013_p12, %p1012_p1 }
  0x24   : > { %p1008_p6 = pneg %p1007_p10 }
  0x26   : > { %p1015_p4 = pnand %p1014_p0, %p1008_p6 }
  0x28   : > { %1018 = shalt.err (!%p1015_p4)
}
  0x29   : > { %s1167_s17 = smov 256   ;;  %s1168_s19 = smov 16  }
  0x2a   : > { %912 = dma.hbm_to_vmem [thread:$0]  (!%p1279_p11), %s1488_s1, 4096, %s1272_s15, [#allocation7], %s1167_s17, %s1167_s17, %s1168_s19  }
  0x2b   : > { %s1019_s30 = scalar_lea.hbm %s1490_s3, 4096 }
  0x2c   : > { %p1020_p1 = scmp.ne.s32.totalorder %s1490_s3, %s1019_s30  ;;  %p1026_p10 = scmp.lt.u32.totalorder %s1019_s30, %s1490_s3 }
  0x2e   : > { %p1022_p4 = pnand %p1020_p1, %p993_p13 }
  0x30   : > { %p1023_p6 = pneg %p1022_p4 }
  0x32   : > { %p1028_p3 = pnand %p1026_p10, %p1023_p6 }
  0x34   : > { %1031 = shalt.err (!%p1028_p3)
}
  0x35   : > { %s1032_s15 = scalar_lea.vmem %s1283_s18, 4096  ;;  %p1040_p12 = scmp.lt.s32.totalorder %s1283_s18, %s1283_s18 }
  0x36   : > { %p1033_p5 = scmp.ne.s32.totalorder %s1283_s18, %s1032_s15  ;;  %p1041_p0 = scmp.lt.s32.totalorder %s1032_s15, %s1032_s15 }
  0x38   : > { %p1035_p7 = pnand %p1033_p5, %p993_p13  ;;  %p1042_p1 = por %p1041_p0, %p1040_p12 }
  0x3a   : > { %p1036_p9 = pneg %p1035_p7 }
  0x3c   : > { %p1043_p4 = pnand %p1042_p1, %p1036_p9 }
  0x3e   : > { %1046 = shalt.err (!%p1043_p4)
}
  0x3f   : > { %s1169_s24 = smov 128   ;;  %s1170_s12 = smov 8  }
  0x40   : > { %915 = dma.hbm_to_vmem [thread:$0]  (!%p1279_p11), %s1490_s3, 4096, %s1283_s18, [#allocation7], %s1169_s24, %s1169_s24, %s1170_s12  }
  0x41   : > { %s36_s20 = sadd.s32 1, %s1159_s28  ;;  %s43_s21 = sadd.s32 1, %s1151_s26 }
  0x42   : > { %p38_p13 = scmp.ge.s32.totalorder %s36_s20, 2  ;;  %p50_p6 = scmp.ne.s32.totalorder %s1151_s26, %s1147_s25 }
  0x43   : > { %p51_p10 = scmp.eq.s32.totalorder %s1163_s29, 0  ;;  %p926_p3 = scmp.lt.s32.totalorder %s1163_s29, 2 }
  0x44   : > { %s1524_s20 = smov (%p38_p13, %s36_s20), 0  ;;  %p1347_p7 = por %p1252_p2, %p50_p6 }
  0x45   : > { %p52_p5 = por %p51_p10, %p50_p6  ;;  %s40_s16 = ssub.s32 %s1159_s28, %s1524_s20 }
  0x46   : > { %s1509_s22 = scalar_select %p1347_p7, 1, 0 }
  0x47   : > { %s296_s23 = sand.u32 1, %s1151_s26   ;;  %p41_p9 = scmp.eq.s32.totalorder %s40_s16, 0 }
  0x48   : > { %s784_s18 = sshll.u32 %s296_s23, 3  ;;  %s785_s30 = sshll.u32 %s1159_s28, 7 }
  0x49   : > { %s1356_s8 = scalar_select %p41_p9, %s1151_s26, %s43_s21  }
  0x4a   : > { %s1361_s24 = scalar_lea.hbm %s1487_s0, %s785_s30  ;;  %s300_s10 = scalar_lea.vmem [#allocation3], %s784_s18 }
  0x4b   : > { %s307_s12 = sshll.u32 %s300_s10, 4  ;;  %p1365_p2 = pnand %p926_p3, %p52_p5  ;;  %s1369_s12 = int_to_ptr.vmem [resolvable:$true] %s307_s12 }
  0x4c   : > { %s297_s19 = scalar_lea.sflag [#allocation4], %s296_s23  ;;  %s1047_s21 = scalar_lea.hbm %s1361_s24, 128 }
  0x4d   : > { %p1048_p11 = scmp.ne.s32.totalorder %s1361_s24, %s1047_s21  ;;  %p1049_p12 = pneg %p1365_p2 }
  0x4e   : > { %s1052_s30 = scalar_lea.hbm %s1487_s0, 256  ;;  %p1053_p4 = scmp.lt.u32.totalorder %s1361_s24, %s1487_s0 }
  0x4f   : > { %p1050_p0 = pnand %p1049_p12, %p1048_p11  ;;  %p1054_p13 = scmp.lt.u32.totalorder %s1052_s30, %s1047_s21 }
  0x50   : > { %p1056_p10 = scmp.lt.u32.totalorder %s1047_s21, %s1361_s24 }
  0x51   : > { %p1051_p1 = pneg %p1050_p0  ;;  %p1055_p6 = por %p1054_p13, %p1053_p4 }
  0x53   : > { %p1057_p3 = por %p1056_p10, %p1055_p6 }
  0x55   : > { %p1058_p5 = pnand %p1057_p3, %p1051_p1 }
  0x57   : > { %1061 = shalt.err (!%p1058_p5)
}
  0x58   : > { %s1062_s23 = scalar_lea.vmem %s1369_s12, 128  ;;  %s1171_s10 = smov [#allocation3]  }
  0x59   : > { %p1063_p9 = scmp.ne.s32.totalorder %s1369_s12, %s1062_s23  ;;  %s1067_s16 = sshll.u32 %s1171_s10, 4  ;;  %s1068_s16 = int_to_ptr.vmem [resolvable:$false] %s1067_s16 }
  0x5a   : > { %s1069_s18 = scalar_lea.vmem %s1068_s16, 256  ;;  %p1070_p7 = scmp.lt.s32.totalorder %s1369_s12, %s1068_s16 }
  0x5b   : > { %p1065_p11 = pnand %p1063_p9, %p1049_p12  ;;  %p1071_p4 = scmp.lt.s32.totalorder %s1069_s18, %s1062_s23 }
  0x5d   : > { %p1066_p0 = pneg %p1065_p11  ;;  %p1072_p13 = por %p1071_p4, %p1070_p7 }
  0x5f   : > { %p1073_p6 = pnand %p1072_p13, %p1066_p0 }
  0x61   : > { %1076 = shalt.err (!%p1073_p6)
}
  0x62   : > { %919 = dma.hbm_to_vmem [thread:$0]  (!%p1365_p2), %s1361_s24, 128, %s1369_s12, %s297_s19  }
  0x63   : > { %316 = sbr.rel (%p1268_p8) target bundleno = 922 (0x39a), region = 48  ;;  %s1399_s21 = sand.u32 (!%p1268_p8), 1, %s1147_s25  }
  0x64   : > { %s787_s30 = sshll.u32 (!%p1268_p8), %s1399_s21, 3  ;;  %s319_s14 = scalar_lea.sflag (!%p1268_p8), [#allocation4], %s1399_s21 }
  0x65   : > { %s1405_s15 = scalar_lea.vmem (!%p1268_p8), [#allocation3], %s787_s30  ;;  %p1511_p7 = scmp.ne.s32.totalorder (!%p1268_p8), %s1504_s11, 0 }
  0x6a   : > { %1130 = dma.done.wait (%p1511_p7), %s319_s14, 128  }
  0x6b   : > { %1132 = vsyncadd (%p1511_p7), %s319_s14, 4294967168  ;;  %p1512_p2 = scmp.ne.s32.totalorder %s1502_s9, 0 }
  0x6d   : > { %1134 = dma.done.wait (%p1512_p2), [#allocation7], 8192  }
  0x6e   : > { %1136 = vsyncadd (%p1512_p2), [#allocation7], 4294959104  ;;  %v1172_v0 = vmov 0.0   ;;  %v379_v1 = vld [vmem:[#allocation6 + $0x8] sm:$0xff]  ;;  %v381_v2 = vld [vmem:[#allocation6 + $0x18] sm:$0xff]  ;;  %s795_s10 = sshll.u32 %s1155_s27, 7 }
  0x6f   : > { %486 = vmatprep.mubr.f32.mxu0 %v1172_v0  ;;  %v378_v3 = vld [vmem:[#allocation6] sm:$0xff]  ;;  %v833_v4 = vpack.c.bf16 %v381_v2, %v379_v1  ;;  %v380_v5 = vld [vmem:[#allocation6 + $0x10] sm:$0xff]  ;;  %v383_v6 = vld [vmem:[#allocation6 + $0x28] sm:$0xff]  ;;  %s364_s16 = scalar_lea.vmem [#allocation9], %s787_s30  ;;  %s1438_s9 = scalar_lea.hbm %s1494_s7, %s795_s10 }
  0x70   : > { %v385_v7 = vld [vmem:[#allocation6 + $0x38] sm:$0xff]  ;;  %v835_v8 = vpack.c.bf16 %v380_v5, %v378_v3  ;;  %v382_v10 = vld [vmem:[#allocation6 + $0x20] sm:$0xff]  ;;  %v384_v11 = vld [vmem:[#allocation6 + $0x30] sm:$0xff]  ;;  %s664_s18 = sshll.u32 %s364_s16, 4  ;;  %s651_s11 = scalar_lea.sflag [#allocation5], %s1399_s21  ;;  %s1440_s18 = int_to_ptr.vmem [resolvable:$true] %s664_s18 }
  0x71   : > { %v837_v9 = vpack.c.bf16 %v385_v7, %v383_v6  ;;  %v387_v12 = vld [vmem:[#allocation6 + $0x48] sm:$0xff]  ;;  %834 = vmatprep.subr.bf16.mxu0 %v833_v4  ;;  %v389_v13 = vld [vmem:[#allocation6 + $0x58] sm:$0xff]  ;;  %v839_v14 = vpack.c.bf16 %v384_v11, %v382_v10  ;;  %v386_v16 = vld [vmem:[#allocation6 + $0x40] sm:$0xff]  ;;  %s1077_s13 = scalar_lea.vmem %s1440_s18, 128  ;;  %p1513_p12 = scmp.ne.s32.totalorder %s1509_s22, 0 }
  0x72   : > { %836 = vmatpush1.bf16.msra.mxu0 %v835_v8  ;;  %v841_v15 = vpack.c.bf16 %v389_v13, %v387_v12  ;;  %v388_v17 = vld [vmem:[#allocation6 + $0x50] sm:$0xff]  ;;  %v391_v18 = vld [vmem:[#allocation6 + $0x68] sm:$0xff]  ;;  %v393_v19 = vld [vmem:[#allocation6 + $0x78] sm:$0xff]  ;;  %p1078_p8 = scmp.ne.s32.totalorder %s1440_s18, %s1077_s13  ;;  %s1173_s27 = smov [#allocation9]  }
  0x73   : > { %838 = vmatprep.subr.bf16.mxu0 %v837_v9  ;;  %v843_v20 = vpack.c.bf16 %v388_v17, %v386_v16  ;;  %v845_v21 = vpack.c.bf16 %v393_v19, %v391_v18  ;;  %v390_v22 = vld [vmem:[#allocation6 + $0x60] sm:$0xff]  ;;  %v392_v23 = vld [vmem:[#allocation6 + $0x70] sm:$0xff]  ;;  %v395_v24 = vld [vmem:[#allocation6 + $0x88] sm:$0xff]  ;;  %s1081_s30 = sshll.u32 %s1173_s27, 4  ;;  %s1082_s30 = int_to_ptr.vmem [resolvable:$false] %s1081_s30 }
  0x74   : > { %v397_v25 = vld [vmem:[#allocation6 + $0x98] sm:$0xff]  ;;  %v394_v26 = vld [vmem:[#allocation6 + $0x80] sm:$0xff]  ;;  %v396_v27 = vld [vmem:[#allocation6 + $0x90] sm:$0xff]  ;;  %v847_v31 = vpack.c.bf16 %v392_v23, %v390_v22  ;;  %p1079_p1 = pnand %p1078_p8, %p1513_p12  ;;  %s1083_s24 = scalar_lea.vmem %s1082_s30, 256 }
  0x75   : > { %v520_v28 = vld [vmem:[#allocation8 + $0x80] sm:$0xff]  ;;  %v521_v29 = vld [vmem:[#allocation8 + $0x88] sm:$0xff]  ;;  %v522_v34 = vld [vmem:[#allocation8 + $0x90] sm:$0xff]  ;;  %v849_v36 = vpack.c.bf16 %v397_v25, %v395_v24  ;;  %v851_v46 = vpack.c.bf16 %v396_v27, %v394_v26  ;;  %p1084_p3 = scmp.lt.s32.totalorder %s1440_s18, %s1082_s30  ;;  %p1085_p5 = scmp.lt.s32.totalorder %s1083_s24, %s1077_s13 }
  0x76   : > { %840 = vmatpush1.bf16.msra.mxu0 %v839_v14  ;;  %v504_v30 = vld [vmem:[#allocation8] sm:$0xff]  ;;  %v865_v32 = vpack.c.bf16 %v521_v29, %v520_v28  ;;  %v505_v33 = vld [vmem:[#allocation8 + $0x8] sm:$0xff]  ;;  %v523_v35 = vld [vmem:[#allocation8 + $0x98] sm:$0xff]  ;;  %p1080_p10 = pneg %p1079_p1 }
  0x77   : > { %842 = vmatprep.subr.bf16.mxu0 %v841_v15  ;;  %v867_v37 = vpack.c.bf16 %v505_v33, %v504_v30  ;;  %v869_v38 = vpack.c.bf16 %v523_v35, %v522_v34  ;;  %v506_v39 = vld [vmem:[#allocation8 + $0x10] sm:$0xff]  ;;  %v507_v40 = vld [vmem:[#allocation8 + $0x18] sm:$0xff]  ;;  %v524_v41 = vld [vmem:[#allocation8 + $0xa0] sm:$0xff]  ;;  %v412_v34 = vlaneseq  ;;  %p1086_p9 = por %p1085_p5, %p1084_p3 }
  0x78   : > { %v399_v42 = vld [vmem:[#allocation6 + $0xa8] sm:$0xff]  ;;  %v401_v43 = vld [vmem:[#allocation6 + $0xb8] sm:$0xff]  ;;  %866 = vmatprep.subr.bf16.mxu1 %v865_v32  ;;  %v871_v45 = vpack.c.bf16 %v507_v40, %v506_v39  ;;  %v508_v48 = vld [vmem:[#allocation8 + $0x20] sm:$0xff] }
  0x79   : > { %v525_v44 = vld [vmem:[#allocation8 + $0xa8] sm:$0xff]  ;;  %868 = vmatpush3.bf16.msra.mxu1 %v867_v37  ;;  %v853_v50 = vpack.c.bf16 %v401_v43, %v399_v42  ;;  %v398_v51 = vld [vmem:[#allocation6 + $0xa0] sm:$0xff]  ;;  %v400_v52 = vld [vmem:[#allocation6 + $0xb0] sm:$0xff]  ;;  %v413_v35 = vshrl.u32 %v412_v34, 7  ;;  %p1087_p11 = pnand %p1086_p9, %p1080_p10 }
  0x7a   : > { %844 = vmatpush1.bf16.msra.mxu0 %v843_v20  ;;  %870 = vmatprep.subr.bf16.mxu1 %v869_v38  ;;  %v873_v47 = vpack.c.bf16 %v525_v44, %v524_v41  ;;  %v509_v49 = vld [vmem:[#allocation8 + $0x28] sm:$0xff]  ;;  %v405_v54 = vld [vmem:[#allocation6 + $0xd8] sm:$0xff]  ;;  %v855_v56 = vpack.c.bf16 %v400_v52, %v398_v51  ;;  %v402_v58 = vld [vmem:[#allocation6 + $0xc0] sm:$0xff] }
  0x7b   : > { %846 = vmatprep.subr.bf16.mxu0 %v845_v21  ;;  %v403_v53 = vld [vmem:[#allocation6 + $0xc8] sm:$0xff]  ;;  %v875_v55 = vpack.c.bf16 %v509_v49, %v508_v48  ;;  %v404_v59 = vld [vmem:[#allocation6 + $0xd0] sm:$0xff]  ;;  %v409_v61 = vld [vmem:[#allocation6 + $0xf8] sm:$0xff]  ;;  %v418_v38 = vsub.s32 1, %v413_v35 }
  0x7c   : > { %v857_v57 = vpack.c.bf16 %v405_v54, %v403_v53  ;;  %v407_v60 = vld [vmem:[#allocation6 + $0xe8] sm:$0xff]  ;;  %v859_v62 = vpack.c.bf16 %v404_v59, %v402_v58  ;;  %v406_v0 = vld [vmem:[#allocation6 + $0xe0] sm:$0xff]  ;;  %v408_v1 = vld [vmem:[#allocation6 + $0xf0] sm:$0xff] }
  0x7d   : > { %872 = vmatpush3.bf16.msra.mxu1 %v871_v45  ;;  %v861_v63 = vpack.c.bf16 %v409_v61, %v407_v60  ;;  %v863_v2 = vpack.c.bf16 %v408_v1, %v406_v0  ;;  %v1416_v3 = vld [vmem:[%s1405_s15] sm:$0xff]  ;;  %v528_v10 = vld [vmem:[#allocation8 + $0xc0] sm:$0xff]  ;;  %v529_v11 = vld [vmem:[#allocation8 + $0xc8] sm:$0xff] }
  0x7e   : > { %848 = vmatpush1.bf16.msra.mxu0 %v847_v31  ;;  %874 = vmatprep.subr.bf16.mxu1 %v873_v47  ;;  %v526_v4 = vld [vmem:[#allocation8 + $0xb0] sm:$0xff]  ;;  %v527_v5 = vld [vmem:[#allocation8 + $0xb8] sm:$0xff]  ;;  %v881_v12 = vpack.c.bf16 %v529_v11, %v528_v10  ;;  %v512_v13 = vld [vmem:[#allocation8 + $0x40] sm:$0xff] }
  0x7f   : > { %850 = vmatprep.subr.bf16.mxu0 %v849_v36  ;;  %v877_v6 = vpack.c.bf16 %v527_v5, %v526_v4  ;;  %v510_v7 = vld [vmem:[#allocation8 + $0x30] sm:$0xff]  ;;  %v511_v8 = vld [vmem:[#allocation8 + $0x38] sm:$0xff]  ;;  %v513_v14 = vld [vmem:[#allocation8 + $0x48] sm:$0xff]  ;;  %v414_v36 = vsub.s32 0, %v413_v35 }
  0x80   : > { %v879_v9 = vpack.c.bf16 %v511_v8, %v510_v7  ;;  %v883_v15 = vpack.c.bf16 %v513_v14, %v512_v13  ;;  %v530_v16 = vld [vmem:[#allocation8 + $0xd0] sm:$0xff]  ;;  %v531_v17 = vld [vmem:[#allocation8 + $0xd8] sm:$0xff]  ;;  %v532_v22 = vld [vmem:[#allocation8 + $0xe0] sm:$0xff] }
  0x81   : > { %876 = vmatpush3.bf16.msra.mxu1 %v875_v55  ;;  %v885_v18 = vpack.c.bf16 %v531_v17, %v530_v16  ;;  %v514_v19 = vld [vmem:[#allocation8 + $0x50] sm:$0xff]  ;;  %v515_v20 = vld [vmem:[#allocation8 + $0x58] sm:$0xff]  ;;  %v533_v23 = vld [vmem:[#allocation8 + $0xe8] sm:$0xff] }
  0x82   : > { %852 = vmatpush1.bf16.msra.mxu0 %v851_v46  ;;  %878 = vmatprep.subr.bf16.mxu1 %v877_v6  ;;  %v887_v21 = vpack.c.bf16 %v515_v20, %v514_v19  ;;  %v889_v24 = vpack.c.bf16 %v533_v23, %v532_v22  ;;  %v516_v25 = vld [vmem:[#allocation8 + $0x60] sm:$0xff]  ;;  %v517_v26 = vld [vmem:[#allocation8 + $0x68] sm:$0xff]  ;;  %v534_v28 = vld [vmem:[#allocation8 + $0xf0] sm:$0xff] }
  0x83   : > { %854 = vmatprep.subr.bf16.mxu0 %v853_v50  ;;  %v891_v27 = vpack.c.bf16 %v517_v26, %v516_v25  ;;  %v535_v29 = vld [vmem:[#allocation8 + $0xf8] sm:$0xff]  ;;  %v518_v31 = vld [vmem:[#allocation8 + $0x70] sm:$0xff] }
  0x84   : > { %v893_v30 = vpack.c.bf16 %v535_v29, %v534_v28  ;;  %v519_v32 = vld [vmem:[#allocation8 + $0x78] sm:$0xff]  ;;  %v410_v37 = vld [vmem:[%s1489_s2] sm:$0x3] }
  0x85   : > { %880 = vmatpush3.bf16.msra.mxu1 %v879_v9  ;;  %v895_v33 = vpack.c.bf16 %v519_v32, %v518_v31  ;;  %v415_v39 = vrot.slane %v410_v37, %v414_v36  ;;  %v419_v40 = vrot.slane %v410_v37, %v418_v38  ;;  %v792_v6 = vld [vmem:[%s1492_s5] ss:$0 sm:$0xff] }
  0x86   : > { %856 = vmatpush1.bf16.msra.mxu0 %v855_v56  ;;  %882 = vmatprep.subr.bf16.mxu1 %v881_v12 }
  0x87   : > { %858 = vmatprep.subr.bf16.mxu0 %v857_v57  ;;  %v791_v57 = vld [vmem:[%s1491_s4] ss:$0 sm:$0xff] }
  0x89   : > { %884 = vmatpush3.bf16.msra.mxu1 %v883_v15 }
  0x8a   : > { %860 = vmatpush1.bf16.msra.mxu0 %v859_v62  ;;  %886 = vmatprep.subr.bf16.mxu1 %v885_v18 }
  0x8b   : > { %862 = vmatprep.subr.bf16.mxu0 %v861_v63 }
  0x8d   : > { %888 = vmatpush3.bf16.msra.mxu1 %v887_v21 }
  0x8e   : > { %864 = vmatpush1.bf16.msra.mxu0 %v863_v2  ;;  %890 = vmatprep.subr.bf16.mxu1 %v889_v24 }
  0x91   : > { %487 = vmatmul.mubr.f32.vlgmr.msra.gmra.mrb[0].mxu0 %v1416_v3  ;;  %892 = vmatpush3.bf16.msra.mxu1 %v891_v27 }
  0x92   : > { %894 = vmatprep.subr.bf16.mxu1 %v893_v30 }
  0x95   : > { %896 = vmatpush3.bf16.msra.mxu1 %v895_v33 }
 0x164   : > { %v488_v41 = vpop.f32.mrb[0].mxu0 }
 0x165   : > { %v489_v42 = vadd.f32 %v488_v41, %v415_v39  ;;  %v490_v43 = vpop.f32.mrb[1].mxu0 }
 0x166   : > { %v491_v44 = vadd.f32 %v490_v43, %v419_v40 }
 0x167   : > { %v495_v45 = vmul.f32 0.70710677, %v489_v42  ;;  %v493_v52 = vmul.f32 0.5, %v489_v42 }
 0x168   : > { %v496_v46 = vmul.f32 0.70710677, %v491_v44  ;;  %v494_v50 = vmul.f32 0.5, %v491_v44 }
 0x169   : > { %985 = verf.f32 %v495_v45 }
 0x16a   : > { %987 = verf.f32 %v496_v46 }
 0x173   : > { %v986_v47 = vpop.eup %985 }
 0x174   : > { %v988_v48 = vpop.eup %987  ;;  %v499_v49 = vadd.f32 1.0, %v986_v47 }
 0x175   : > { %v500_v51 = vadd.f32 1.0, %v988_v48 }
 0x176   : > { %v501_v54 = vmul.f32 %v499_v49, %v493_v52 }
 0x177   : > { %v502_v53 = vmul.f32 %v500_v51, %v494_v50 }
 0x179   : > { %600 = vmatprep.mubr.f32.mxu1 %v502_v53 }
 0x17a   : > { %601 = vmatmul.mubr.f32.vlgmr.msra.gmra.mrb[0].mxu1 %v501_v54 }
 0x24d   : > { %v830_v55 = vpop.f32.mrb[0].mxu1 }
 0x24e   : > { %v831_v56 = vpop.f32.mrb[1].mxu1 }
 0x24f   : > { %v832_v58 = vadd.f32 %v831_v56, %v830_v55 }
 0x251   : > { %v619_v59 = vadd.f32 %v832_v58, %v791_v57 }
 0x253   : > { %v620_v60 = vadd.f32 %v619_v59, %v1416_v3  ;;  %v793_v3 = vld [vmem:[%s1493_s6] ss:$0 sm:$0xff] }
 0x255   : > { %621 = vadd.xlane.f32.xlu0 %v620_v60 }
 0x2e2   : > { %v622_v61 = vpop.xlane.xlu0 %621 }
 0x2e3   : > { %v624_v62 = vmul.f32 0.0078125, %v622_v61 }
 0x2e5   : > { %v625_v63 = vsub.f32 %v620_v60, %v624_v62 }
 0x2e7   : > { %v626_v0 = vmul.f32 %v625_v63, %v625_v63 }
 0x2e9   : > { %627 = vadd.xlane.f32.xlu0 %v626_v0 }
 0x376   : > { %v628_v1 = vpop.xlane.xlu0 %627 }
 0x377   : > { %v629_v2 = vmul.f32 0.0078125, %v628_v1 }
 0x379   : > { %v630_v4 = vadd.f32 1e-12, %v629_v2 }
 0x37b   : > { %989 = vrsqrt.f32 %v630_v4 }
 0x385   : > { %v990_v5 = vpop.eup %989 }
 0x386   : > { %v632_v7 = vmul.f32 %v990_v5, %v625_v63 }
 0x388   : > { %v640_v8 = vmul.f32 %v792_v6, %v632_v7 }
 0x38a   : > { %v648_v9 = vadd.f32 %v793_v3, %v640_v8 }
 0x38c   : > { %649 = vst [vmem:[%s364_s16] sm:$0xff] %v648_v9 }
 0x38d   : > { %1090 = shalt.err (!%p1087_p11)
}
 0x38e   : > { %s1091_s21 = scalar_lea.hbm %s1438_s9, 128  ;;  %s1095_s19 = scalar_lea.hbm %s1494_s7, 256 }
 0x38f   : > { %p1092_p0 = scmp.ne.s32.totalorder %s1438_s9, %s1091_s21  ;;  %p1096_p6 = scmp.lt.u32.totalorder %s1438_s9, %s1494_s7 }
 0x390   : > { %p1097_p7 = scmp.lt.u32.totalorder %s1095_s19, %s1091_s21  ;;  %p1099_p8 = scmp.lt.u32.totalorder %s1091_s21, %s1438_s9 }
 0x391   : > { %p1093_p4 = pnand %p1092_p0, %p1513_p12 }
 0x392   : > { %p1098_p2 = por %p1097_p7, %p1096_p6 }
 0x393   : > { %p1094_p13 = pneg %p1093_p4 }
 0x394   : > { %p1100_p1 = por %p1099_p8, %p1098_p2 }
 0x396   : > { %p1101_p10 = pnand %p1100_p1, %p1094_p13 }
 0x398   : > { %1104 = shalt.err (!%p1101_p10)
}
 0x399   : > { %907 = dma.vmem_to_hbm [thread:$0]  (%p1513_p12), %s1440_s18, 128, %s1438_s9, %s651_s11  }
 0x39a PF: > { %s1514_s16 = sld [smem:[#allocation13_spill]]  ;;  %s1515_s14 = sld [smem:[#allocation14_spill]] }
 0x39b   : > { %p1517_p5 = scmp.ge.s32.totalorder %s1163_s29, 2 }
 0x3a0   : > { %s676_s15 = sand.u32 1, %s1514_s16   ;;  %p1516_p3 = scmp.ne.s32.totalorder %s1515_s14, 0 }
 0x3a1   : > { %s677_s13 = scalar_lea.sflag [#allocation5], %s676_s15 }
 0x3a2   : > { %p921_p9 = pnand %p1517_p5, %p1516_p3 }
 0x3a4   : > { %1138 = dma.done.wait (!%p921_p9), %s677_s13, 128  }
 0x3a5   : > { %1140 = vsyncadd (!%p921_p9), %s677_s13, 4294967168  ;;  %s24_s29 = sadd.s32 1, %s1163_s29   ;;  %s1518_s24 = smov %s1147_s25 }
 0x3a6   : > { %p21_p11 = scmp.ge.s32.totalorder %s24_s29, 4   ;;  %s1519_s25 = smov %s1151_s26 }
 0x3a7   : > { %s1520_s26 = smov %s1356_s8  ;;  %s1521_s27 = smov %s1159_s28 }
 0x3a8   : > { %s1522_s28 = smov %s1524_s20  ;;  %23 = sbr.rel (!%p21_p11) target bundleno = 7 (0x7), region = 114 }
 0x3af   :  { %682 = vsyncpa [#allocation4], 1 }
 0x3b0   :  { %684 = vsyncpa [#allocation4 + $0x1], 1 }
 0x3b1   :  { %685 = vsyncpa [#allocation7], 1 }
 0x3b2   :  { %686 = vsyncpa [#allocation5], 1 }
 0x3b3   :  { %688 = vsyncpa [#allocation5 + $0x1], 1 }

// kernel: tpu_custom_call.1
= control target key start
LH: loop header
LB: loop body
LE: loop exit
PB: predicated region body
PF: predicated region fallthrough
CT: control target
= control target key end

     0   :  { %12 = vsyncpa [#allocation4], 0  ;;  %s1487_s0 = inlined_call_operand.hbm [shape: f32[16,128], index: 0, kind: input, shape index: {}]   ;;  %s1488_s1 = inlined_call_operand.hbm [shape: f32[128,256], index: 1, kind: input, shape index: {}]   ;;  %s1489_s2 = inlined_call_operand.vmem [shape: f32[1,256], index: 2, kind: input, shape index: {}]   ;;  %s1490_s3 = inlined_call_operand.hbm [shape: f32[256,128], index: 3, kind: input, shape index: {}]   ;;  %s1491_s4 = inlined_call_operand.vmem [shape: f32[1,128], index: 4, kind: input, shape index: {}]   ;;  %s1492_s5 = inlined_call_operand.vmem [shape: f32[1,128], index: 5, kind: input, shape index: {}]   ;;  %s1493_s6 = inlined_call_operand.vmem [shape: f32[1,128], index: 6, kind: input, shape index: {}]   ;;  %s1494_s7 = inlined_call_operand.hbm [shape: f32[16,128], index: 7, kind: output, shape index: {}]  }
   0x1   :  { %14 = vsyncpa [#allocation4 + $0x1], 0 }
   0x2   :  { %15 = vsyncpa [#allocation7], 0 }
   0x3   :  { %16 = vsyncpa [#allocation5], 0 }
   0x4   :  { %18 = vsyncpa [#allocation5 + $0x1], 0  ;;  %s1214_s24 = smov 0   ;;  %s1216_s25 = smov 0  }
   0x5   :  { %s1218_s26 = smov 0   ;;  %s1220_s27 = smov 0  }
   0x6   :  { %s1222_s28 = smov 0   ;;  %s1224_s29 = smov 0  }
   0x7 LB: > { %1501 = sst [smem:[#allocation13_spill]] %s1143_s24  ;;  %s777_s30 = sadd.s32 4294967295, %s1163_s29   ;;  %s1163_s29 = sphi %s1224_s29, %s24_s29   ;;  %s1159_s28 = sphi %s1222_s28, %s1522_s28   ;;  %s1155_s27 = sphi %s1220_s27, %s1521_s27   ;;  %s1151_s26 = sphi %s1218_s26, %s1520_s26   ;;  %s1147_s25 = sphi %s1216_s25, %s1519_s25   ;;  %s1143_s24 = sphi %s1214_s24, %s1518_s24  }
   0x8   : > { %s778_s8 = sadd.s32 4294967294, %s1163_s29   ;;  %p56_p0 = scmp.ne.s32.totalorder %s1147_s25, %s1143_s24 }
   0x9   : > { %p1248_p1 = scmp.eq.s32.totalorder %s777_s30, 0  ;;  %p1252_p2 = scmp.eq.s32.totalorder %s777_s30, 1 }
   0xa   : > { %p227_p3 = scmp.eq.s32.totalorder %s778_s8, 1  ;;  %p779_p5 = scmp.ge.s32.totalorder %s1163_s29, 1 }
   0xb   : > { %s1502_s9 = scalar_select %p1248_p1, 1, 0 }
   0xc   : > { %p1258_p4 = por %p1248_p1, %p56_p0  ;;  %p1263_p6 = por %p227_p3, %p56_p0 }
   0xd   : > { %p234_p7 = scmp.lt.s32.totalorder %s1163_s29, 3  ;;  %s1165_s14 = smov [#allocation6]  }
   0xe   : > { %s1504_s11 = scalar_select %p1258_p4, 1, 0 }
   0xf   : > { %s1505_s12 = scalar_select %p1263_p6, 1, 0 }
  0x10   : > { %p1268_p8 = pnand %p779_p5, %p234_p7  ;;  %s249_s15 = sshll.u32 %s1165_s14, 4  ;;  %s1272_s15 = int_to_ptr.vmem [resolvable:$true] %s249_s15 }
  0x11   : > { %1506 = sst [smem:[#allocation14_spill]] %s1505_s12  ;;  %s1166_s17 = smov [#allocation8]  }
  0x12   : > { %p909_p9 = pneg %p1268_p8  ;;  %s273_s18 = sshll.u32 %s1166_s17, 4  ;;  %s1283_s18 = int_to_ptr.vmem [resolvable:$true] %s273_s18 }
  0x13   : > { %s991_s21 = scalar_lea.hbm %s1488_s1, 4096 }
  0x14   : > { %p1279_p11 = pnand %p909_p9, %p1248_p1  ;;  %p992_p12 = scmp.ne.s32.totalorder %s1488_s1, %s991_s21 }
  0x15   : > { %p998_p5 = scmp.lt.u32.totalorder %s991_s21, %s1488_s1 }
  0x16   : > { %p993_p13 = pneg %p1279_p11 }
  0x18   : > { %p994_p0 = pnand %p993_p13, %p992_p12 }
  0x1a   : > { %p995_p3 = pneg %p994_p0 }
  0x1c   : > { %p1000_p7 = pnand %p998_p5, %p995_p3 }
  0x1e   : > { %1003 = shalt.err (!%p1000_p7)
}
  0x1f   : > { %s1004_s14 = scalar_lea.vmem %s1272_s15, 4096  ;;  %p1012_p1 = scmp.lt.s32.totalorder %s1272_s15, %s1272_s15 }
  0x20   : > { %p1005_p9 = scmp.ne.s32.totalorder %s1272_s15, %s1004_s14  ;;  %p1013_p12 = scmp.lt.s32.totalorder %s1004_s14, %s1004_s14 }
  0x22   : > { %p1007_p10 = pnand %p1005_p9, %p993_p13  ;;  %p1014_p0 = por %p1013_p12, %p1012_p1 }
  0x24   : > { %p1008_p6 = pneg %p1007_p10 }
  0x26   : > { %p1015_p4 = pnand %p1014_p0, %p1008_p6 }
  0x28   : > { %1018 = shalt.err (!%p1015_p4)
}
  0x29   : > { %s1167_s17 = smov 256   ;;  %s1168_s19 = smov 16  }
  0x2a   : > { %912 = dma.hbm_to_vmem [thread:$0]  (!%p1279_p11), %s1488_s1, 4096, %s1272_s15, [#allocation7], %s1167_s17, %s1167_s17, %s1168_s19  }
  0x2b   : > { %s1019_s30 = scalar_lea.hbm %s1490_s3, 4096 }
  0x2c   : > { %p1020_p1 = scmp.ne.s32.totalorder %s1490_s3, %s1019_s30  ;;  %p1026_p10 = scmp.lt.u32.totalorder %s1019_s30, %s1490_s3 }
  0x2e   : > { %p1022_p4 = pnand %p1020_p1, %p993_p13 }
  0x30   : > { %p1023_p6 = pneg %p1022_p4 }
  0x32   : > { %p1028_p3 = pnand %p1026_p10, %p1023_p6 }
  0x34   : > { %1031 = shalt.err (!%p1028_p3)
}
  0x35   : > { %s1032_s15 = scalar_lea.vmem %s1283_s18, 4096  ;;  %p1040_p12 = scmp.lt.s32.totalorder %s1283_s18, %s1283_s18 }
  0x36   : > { %p1033_p5 = scmp.ne.s32.totalorder %s1283_s18, %s1032_s15  ;;  %p1041_p0 = scmp.lt.s32.totalorder %s1032_s15, %s1032_s15 }
  0x38   : > { %p1035_p7 = pnand %p1033_p5, %p993_p13  ;;  %p1042_p1 = por %p1041_p0, %p1040_p12 }
  0x3a   : > { %p1036_p9 = pneg %p1035_p7 }
  0x3c   : > { %p1043_p4 = pnand %p1042_p1, %p1036_p9 }
  0x3e   : > { %1046 = shalt.err (!%p1043_p4)
}
  0x3f   : > { %s1169_s24 = smov 128   ;;  %s1170_s12 = smov 8  }
  0x40   : > { %915 = dma.hbm_to_vmem [thread:$0]  (!%p1279_p11), %s1490_s3, 4096, %s1283_s18, [#allocation7], %s1169_s24, %s1169_s24, %s1170_s12  }
  0x41   : > { %s36_s20 = sadd.s32 1, %s1159_s28  ;;  %s43_s21 = sadd.s32 1, %s1151_s26 }
  0x42   : > { %p38_p13 = scmp.ge.s32.totalorder %s36_s20, 2  ;;  %p50_p6 = scmp.ne.s32.totalorder %s1151_s26, %s1147_s25 }
  0x43   : > { %p51_p10 = scmp.eq.s32.totalorder %s1163_s29, 0  ;;  %p926_p3 = scmp.lt.s32.totalorder %s1163_s29, 2 }
  0x44   : > { %s1524_s20 = smov (%p38_p13, %s36_s20), 0  ;;  %p1347_p7 = por %p1252_p2, %p50_p6 }
  0x45   : > { %p52_p5 = por %p51_p10, %p50_p6  ;;  %s40_s16 = ssub.s32 %s1159_s28, %s1524_s20 }
  0x46   : > { %s1509_s22 = scalar_select %p1347_p7, 1, 0 }
  0x47   : > { %s296_s23 = sand.u32 1, %s1151_s26   ;;  %p41_p9 = scmp.eq.s32.totalorder %s40_s16, 0 }
  0x48   : > { %s784_s18 = sshll.u32 %s296_s23, 3  ;;  %s785_s30 = sshll.u32 %s1159_s28, 7 }
  0x49   : > { %s1356_s8 = scalar_select %p41_p9, %s1151_s26, %s43_s21  }
  0x4a   : > { %s1361_s24 = scalar_lea.hbm %s1487_s0, %s785_s30  ;;  %s300_s10 = scalar_lea.vmem [#allocation3], %s784_s18 }
  0x4b   : > { %s307_s12 = sshll.u32 %s300_s10, 4  ;;  %p1365_p2 = pnand %p926_p3, %p52_p5  ;;  %s1369_s12 = int_to_ptr.vmem [resolvable:$true] %s307_s12 }
  0x4c   : > { %s297_s19 = scalar_lea.sflag [#allocation4], %s296_s23  ;;  %s1047_s21 = scalar_lea.hbm %s1361_s24, 128 }
  0x4d   : > { %p1048_p11 = scmp.ne.s32.totalorder %s1361_s24, %s1047_s21  ;;  %p1049_p12 = pneg %p1365_p2 }
  0x4e   : > { %s1052_s30 = scalar_lea.hbm %s1487_s0, 256  ;;  %p1053_p4 = scmp.lt.u32.totalorder %s1361_s24, %s1487_s0 }
  0x4f   : > { %p1050_p0 = pnand %p1049_p12, %p1048_p11  ;;  %p1054_p13 = scmp.lt.u32.totalorder %s1052_s30, %s1047_s21 }
  0x50   : > { %p1056_p10 = scmp.lt.u32.totalorder %s1047_s21, %s1361_s24 }
  0x51   : > { %p1051_p1 = pneg %p1050_p0  ;;  %p1055_p6 = por %p1054_p13, %p1053_p4 }
  0x53   : > { %p1057_p3 = por %p1056_p10, %p1055_p6 }
  0x55   : > { %p1058_p5 = pnand %p1057_p3, %p1051_p1 }
  0x57   : > { %1061 = shalt.err (!%p1058_p5)
}
  0x58   : > { %s1062_s23 = scalar_lea.vmem %s1369_s12, 128  ;;  %s1171_s10 = smov [#allocation3]  }
  0x59   : > { %p1063_p9 = scmp.ne.s32.totalorder %s1369_s12, %s1062_s23  ;;  %s1067_s16 = sshll.u32 %s1171_s10, 4  ;;  %s1068_s16 = int_to_ptr.vmem [resolvable:$false] %s1067_s16 }
  0x5a   : > { %s1069_s18 = scalar_lea.vmem %s1068_s16, 256  ;;  %p1070_p7 = scmp.lt.s32.totalorder %s1369_s12, %s1068_s16 }
  0x5b   : > { %p1065_p11 = pnand %p1063_p9, %p1049_p12  ;;  %p1071_p4 = scmp.lt.s32.totalorder %s1069_s18, %s1062_s23 }
  0x5d   : > { %p1066_p0 = pneg %p1065_p11  ;;  %p1072_p13 = por %p1071_p4, %p1070_p7 }
  0x5f   : > { %p1073_p6 = pnand %p1072_p13, %p1066_p0 }
  0x61   : > { %1076 = shalt.err (!%p1073_p6)
}
  0x62   : > { %919 = dma.hbm_to_vmem [thread:$0]  (!%p1365_p2), %s1361_s24, 128, %s1369_s12, %s297_s19  }
  0x63   : > { %316 = sbr.rel (%p1268_p8) target bundleno = 922 (0x39a), region = 48  ;;  %s1399_s21 = sand.u32 (!%p1268_p8), 1, %s1147_s25  }
  0x64   : > { %s787_s30 = sshll.u32 (!%p1268_p8), %s1399_s21, 3  ;;  %s319_s14 = scalar_lea.sflag (!%p1268_p8), [#allocation4], %s1399_s21 }
  0x65   : > { %s1405_s15 = scalar_lea.vmem (!%p1268_p8), [#allocation3], %s787_s30  ;;  %p1511_p7 = scmp.ne.s32.totalorder (!%p1268_p8), %s1504_s11, 0 }
  0x6a   : > { %1130 = dma.done.wait (%p1511_p7), %s319_s14, 128  }
  0x6b   : > { %1132 = vsyncadd (%p1511_p7), %s319_s14, 4294967168  ;;  %p1512_p2 = scmp.ne.s32.totalorder %s1502_s9, 0 }
  0x6d   : > { %1134 = dma.done.wait (%p1512_p2), [#allocation7], 8192  }
  0x6e   : > { %1136 = vsyncadd (%p1512_p2), [#allocation7], 4294959104  ;;  %v1172_v0 = vmov 0.0   ;;  %v379_v1 = vld [vmem:[#allocation6 + $0x8] sm:$0xff]  ;;  %v381_v2 = vld [vmem:[#allocation6 + $0x18] sm:$0xff]  ;;  %s795_s10 = sshll.u32 %s1155_s27, 7 }
  0x6f   : > { %486 = vmatprep.mubr.f32.mxu0 %v1172_v0  ;;  %v378_v3 = vld [vmem:[#allocation6] sm:$0xff]  ;;  %v833_v4 = vpack.c.bf16 %v381_v2, %v379_v1  ;;  %v380_v5 = vld [vmem:[#allocation6 + $0x10] sm:$0xff]  ;;  %v383_v6 = vld [vmem:[#allocation6 + $0x28] sm:$0xff]  ;;  %s364_s16 = scalar_lea.vmem [#allocation9], %s787_s30  ;;  %s1438_s9 = scalar_lea.hbm %s1494_s7, %s795_s10 }
  0x70   : > { %v385_v7 = vld [vmem:[#allocation6 + $0x38] sm:$0xff]  ;;  %v835_v8 = vpack.c.bf16 %v380_v5, %v378_v3  ;;  %v382_v10 = vld [vmem:[#allocation6 + $0x20] sm:$0xff]  ;;  %v384_v11 = vld [vmem:[#allocation6 + $0x30] sm:$0xff]  ;;  %s664_s18 = sshll.u32 %s364_s16, 4  ;;  %s651_s11 = scalar_lea.sflag [#allocation5], %s1399_s21  ;;  %s1440_s18 = int_to_ptr.vmem [resolvable:$true] %s664_s18 }
  0x71   : > { %v837_v9 = vpack.c.bf16 %v385_v7, %v383_v6  ;;  %v387_v12 = vld [vmem:[#allocation6 + $0x48] sm:$0xff]  ;;  %834 = vmatprep.subr.bf16.mxu0 %v833_v4  ;;  %v389_v13 = vld [vmem:[#allocation6 + $0x58] sm:$0xff]  ;;  %v839_v14 = vpack.c.bf16 %v384_v11, %v382_v10  ;;  %v386_v16 = vld [vmem:[#allocation6 + $0x40] sm:$0xff]  ;;  %s1077_s13 = scalar_lea.vmem %s1440_s18, 128  ;;  %p1513_p12 = scmp.ne.s32.totalorder %s1509_s22, 0 }
  0x72   : > { %836 = vmatpush1.bf16.msra.mxu0 %v835_v8  ;;  %v841_v15 = vpack.c.bf16 %v389_v13, %v387_v12  ;;  %v388_v17 = vld [vmem:[#allocation6 + $0x50] sm:$0xff]  ;;  %v391_v18 = vld [vmem:[#allocation6 + $0x68] sm:$0xff]  ;;  %v393_v19 = vld [vmem:[#allocation6 + $0x78] sm:$0xff]  ;;  %p1078_p8 = scmp.ne.s32.totalorder %s1440_s18, %s1077_s13  ;;  %s1173_s27 = smov [#allocation9]  }
  0x73   : > { %838 = vmatprep.subr.bf16.mxu0 %v837_v9  ;;  %v843_v20 = vpack.c.bf16 %v388_v17, %v386_v16  ;;  %v845_v21 = vpack.c.bf16 %v393_v19, %v391_v18  ;;  %v390_v22 = vld [vmem:[#allocation6 + $0x60] sm:$0xff]  ;;  %v392_v23 = vld [vmem:[#allocation6 + $0x70] sm:$0xff]  ;;  %v395_v24 = vld [vmem:[#allocation6 + $0x88] sm:$0xff]  ;;  %s1081_s30 = sshll.u32 %s1173_s27, 4  ;;  %s1082_s30 = int_to_ptr.vmem [resolvable:$false] %s1081_s30 }
  0x74   : > { %v397_v25 = vld [vmem:[#allocation6 + $0x98] sm:$0xff]  ;;  %v394_v26 = vld [vmem:[#allocation6 + $0x80] sm:$0xff]  ;;  %v396_v27 = vld [vmem:[#allocation6 + $0x90] sm:$0xff]  ;;  %v847_v31 = vpack.c.bf16 %v392_v23, %v390_v22  ;;  %p1079_p1 = pnand %p1078_p8, %p1513_p12  ;;  %s1083_s24 = scalar_lea.vmem %s1082_s30, 256 }
  0x75   : > { %v520_v28 = vld [vmem:[#allocation8 + $0x80] sm:$0xff]  ;;  %v521_v29 = vld [vmem:[#allocation8 + $0x88] sm:$0xff]  ;;  %v522_v34 = vld [vmem:[#allocation8 + $0x90] sm:$0xff]  ;;  %v849_v36 = vpack.c.bf16 %v397_v25, %v395_v24  ;;  %v851_v46 = vpack.c.bf16 %v396_v27, %v394_v26  ;;  %p1084_p3 = scmp.lt.s32.totalorder %s1440_s18, %s1082_s30  ;;  %p1085_p5 = scmp.lt.s32.totalorder %s1083_s24, %s1077_s13 }
  0x76   : > { %840 = vmatpush1.bf16.msra.mxu0 %v839_v14  ;;  %v504_v30 = vld [vmem:[#allocation8] sm:$0xff]  ;;  %v865_v32 = vpack.c.bf16 %v521_v29, %v520_v28  ;;  %v505_v33 = vld [vmem:[#allocation8 + $0x8] sm:$0xff]  ;;  %v523_v35 = vld [vmem:[#allocation8 + $0x98] sm:$0xff]  ;;  %p1080_p10 = pneg %p1079_p1 }
  0x77   : > { %842 = vmatprep.subr.bf16.mxu0 %v841_v15  ;;  %v867_v37 = vpack.c.bf16 %v505_v33, %v504_v30  ;;  %v869_v38 = vpack.c.bf16 %v523_v35, %v522_v34  ;;  %v506_v39 = vld [vmem:[#allocation8 + $0x10] sm:$0xff]  ;;  %v507_v40 = vld [vmem:[#allocation8 + $0x18] sm:$0xff]  ;;  %v524_v41 = vld [vmem:[#allocation8 + $0xa0] sm:$0xff]  ;;  %v412_v34 = vlaneseq  ;;  %p1086_p9 = por %p1085_p5, %p1084_p3 }
  0x78   : > { %v399_v42 = vld [vmem:[#allocation6 + $0xa8] sm:$0xff]  ;;  %v401_v43 = vld [vmem:[#allocation6 + $0xb8] sm:$0xff]  ;;  %866 = vmatprep.subr.bf16.mxu1 %v865_v32  ;;  %v871_v45 = vpack.c.bf16 %v507_v40, %v506_v39  ;;  %v508_v48 = vld [vmem:[#allocation8 + $0x20] sm:$0xff] }
  0x79   : > { %v525_v44 = vld [vmem:[#allocation8 + $0xa8] sm:$0xff]  ;;  %868 = vmatpush3.bf16.msra.mxu1 %v867_v37  ;;  %v853_v50 = vpack.c.bf16 %v401_v43, %v399_v42  ;;  %v398_v51 = vld [vmem:[#allocation6 + $0xa0] sm:$0xff]  ;;  %v400_v52 = vld [vmem:[#allocation6 + $0xb0] sm:$0xff]  ;;  %v413_v35 = vshrl.u32 %v412_v34, 7  ;;  %p1087_p11 = pnand %p1086_p9, %p1080_p10 }
  0x7a   : > { %844 = vmatpush1.bf16.msra.mxu0 %v843_v20  ;;  %870 = vmatprep.subr.bf16.mxu1 %v869_v38  ;;  %v873_v47 = vpack.c.bf16 %v525_v44, %v524_v41  ;;  %v509_v49 = vld [vmem:[#allocation8 + $0x28] sm:$0xff]  ;;  %v405_v54 = vld [vmem:[#allocation6 + $0xd8] sm:$0xff]  ;;  %v855_v56 = vpack.c.bf16 %v400_v52, %v398_v51  ;;  %v402_v58 = vld [vmem:[#allocation6 + $0xc0] sm:$0xff] }
  0x7b   : > { %846 = vmatprep.subr.bf16.mxu0 %v845_v21  ;;  %v403_v53 = vld [vmem:[#allocation6 + $0xc8] sm:$0xff]  ;;  %v875_v55 = vpack.c.bf16 %v509_v49, %v508_v48  ;;  %v404_v59 = vld [vmem:[#allocation6 + $0xd0] sm:$0xff]  ;;  %v409_v61 = vld [vmem:[#allocation6 + $0xf8] sm:$0xff]  ;;  %v418_v38 = vsub.s32 1, %v413_v35 }
  0x7c   : > { %v857_v57 = vpack.c.bf16 %v405_v54, %v403_v53  ;;  %v407_v60 = vld [vmem:[#allocation6 + $0xe8] sm:$0xff]  ;;  %v859_v62 = vpack.c.bf16 %v404_v59, %v402_v58  ;;  %v406_v0 = vld [vmem:[#allocation6 + $0xe0] sm:$0xff]  ;;  %v408_v1 = vld [vmem:[#allocation6 + $0xf0] sm:$0xff] }
  0x7d   : > { %872 = vmatpush3.bf16.msra.mxu1 %v871_v45  ;;  %v861_v63 = vpack.c.bf16 %v409_v61, %v407_v60  ;;  %v863_v2 = vpack.c.bf16 %v408_v1, %v406_v0  ;;  %v1416_v3 = vld [vmem:[%s1405_s15] sm:$0xff]  ;;  %v528_v10 = vld [vmem:[#allocation8 + $0xc0] sm:$0xff]  ;;  %v529_v11 = vld [vmem:[#allocation8 + $0xc8] sm:$0xff] }
  0x7e   : > { %848 = vmatpush1.bf16.msra.mxu0 %v847_v31  ;;  %874 = vmatprep.subr.bf16.mxu1 %v873_v47  ;;  %v526_v4 = vld [vmem:[#allocation8 + $0xb0] sm:$0xff]  ;;  %v527_v5 = vld [vmem:[#allocation8 + $0xb8] sm:$0xff]  ;;  %v881_v12 = vpack.c.bf16 %v529_v11, %v528_v10  ;;  %v512_v13 = vld [vmem:[#allocation8 + $0x40] sm:$0xff] }
  0x7f   : > { %850 = vmatprep.subr.bf16.mxu0 %v849_v36  ;;  %v877_v6 = vpack.c.bf16 %v527_v5, %v526_v4  ;;  %v510_v7 = vld [vmem:[#allocation8 + $0x30] sm:$0xff]  ;;  %v511_v8 = vld [vmem:[#allocation8 + $0x38] sm:$0xff]  ;;  %v513_v14 = vld [vmem:[#allocation8 + $0x48] sm:$0xff]  ;;  %v414_v36 = vsub.s32 0, %v413_v35 }
  0x80   : > { %v879_v9 = vpack.c.bf16 %v511_v8, %v510_v7  ;;  %v883_v15 = vpack.c.bf16 %v513_v14, %v512_v13  ;;  %v530_v16 = vld [vmem:[#allocation8 + $0xd0] sm:$0xff]  ;;  %v531_v17 = vld [vmem:[#allocation8 + $0xd8] sm:$0xff]  ;;  %v532_v22 = vld [vmem:[#allocation8 + $0xe0] sm:$0xff] }
  0x81   : > { %876 = vmatpush3.bf16.msra.mxu1 %v875_v55  ;;  %v885_v18 = vpack.c.bf16 %v531_v17, %v530_v16  ;;  %v514_v19 = vld [vmem:[#allocation8 + $0x50] sm:$0xff]  ;;  %v515_v20 = vld [vmem:[#allocation8 + $0x58] sm:$0xff]  ;;  %v533_v23 = vld [vmem:[#allocation8 + $0xe8] sm:$0xff] }
  0x82   : > { %852 = vmatpush1.bf16.msra.mxu0 %v851_v46  ;;  %878 = vmatprep.subr.bf16.mxu1 %v877_v6  ;;  %v887_v21 = vpack.c.bf16 %v515_v20, %v514_v19  ;;  %v889_v24 = vpack.c.bf16 %v533_v23, %v532_v22  ;;  %v516_v25 = vld [vmem:[#allocation8 + $0x60] sm:$0xff]  ;;  %v517_v26 = vld [vmem:[#allocation8 + $0x68] sm:$0xff]  ;;  %v534_v28 = vld [vmem:[#allocation8 + $0xf0] sm:$0xff] }
  0x83   : > { %854 = vmatprep.subr.bf16.mxu0 %v853_v50  ;;  %v891_v27 = vpack.c.bf16 %v517_v26, %v516_v25  ;;  %v535_v29 = vld [vmem:[#allocation8 + $0xf8] sm:$0xff]  ;;  %v518_v31 = vld [vmem:[#allocation8 + $0x70] sm:$0xff] }
  0x84   : > { %v893_v30 = vpack.c.bf16 %v535_v29, %v534_v28  ;;  %v519_v32 = vld [vmem:[#allocation8 + $0x78] sm:$0xff]  ;;  %v410_v37 = vld [vmem:[%s1489_s2] sm:$0x3] }
  0x85   : > { %880 = vmatpush3.bf16.msra.mxu1 %v879_v9  ;;  %v895_v33 = vpack.c.bf16 %v519_v32, %v518_v31  ;;  %v415_v39 = vrot.slane %v410_v37, %v414_v36  ;;  %v419_v40 = vrot.slane %v410_v37, %v418_v38  ;;  %v792_v6 = vld [vmem:[%s1492_s5] ss:$0 sm:$0xff] }
  0x86   : > { %856 = vmatpush1.bf16.msra.mxu0 %v855_v56  ;;  %882 = vmatprep.subr.bf16.mxu1 %v881_v12 }
  0x87   : > { %858 = vmatprep.subr.bf16.mxu0 %v857_v57  ;;  %v791_v57 = vld [vmem:[%s1491_s4] ss:$0 sm:$0xff] }
  0x89   : > { %884 = vmatpush3.bf16.msra.mxu1 %v883_v15 }
  0x8a   : > { %860 = vmatpush1.bf16.msra.mxu0 %v859_v62  ;;  %886 = vmatprep.subr.bf16.mxu1 %v885_v18 }
  0x8b   : > { %862 = vmatprep.subr.bf16.mxu0 %v861_v63 }
  0x8d   : > { %888 = vmatpush3.bf16.msra.mxu1 %v887_v21 }
  0x8e   : > { %864 = vmatpush1.bf16.msra.mxu0 %v863_v2  ;;  %890 = vmatprep.subr.bf16.mxu1 %v889_v24 }
  0x91   : > { %487 = vmatmul.mubr.f32.vlgmr.msra.gmra.mrb[0].mxu0 %v1416_v3  ;;  %892 = vmatpush3.bf16.msra.mxu1 %v891_v27 }
  0x92   : > { %894 = vmatprep.subr.bf16.mxu1 %v893_v30 }
  0x95   : > { %896 = vmatpush3.bf16.msra.mxu1 %v895_v33 }
 0x164   : > { %v488_v41 = vpop.f32.mrb[0].mxu0 }
 0x165   : > { %v489_v42 = vadd.f32 %v488_v41, %v415_v39  ;;  %v490_v43 = vpop.f32.mrb[1].mxu0 }
 0x166   : > { %v491_v44 = vadd.f32 %v490_v43, %v419_v40 }
 0x167   : > { %v495_v45 = vmul.f32 0.70710677, %v489_v42  ;;  %v493_v52 = vmul.f32 0.5, %v489_v42 }
 0x168   : > { %v496_v46 = vmul.f32 0.70710677, %v491_v44  ;;  %v494_v50 = vmul.f32 0.5, %v491_v44 }
 0x169   : > { %985 = verf.f32 %v495_v45 }
 0x16a   : > { %987 = verf.f32 %v496_v46 }
 0x173   : > { %v986_v47 = vpop.eup %985 }
 0x174   : > { %v988_v48 = vpop.eup %987  ;;  %v499_v49 = vadd.f32 1.0, %v986_v47 }
 0x175   : > { %v500_v51 = vadd.f32 1.0, %v988_v48 }
 0x176   : > { %v501_v54 = vmul.f32 %v499_v49, %v493_v52 }
 0x177   : > { %v502_v53 = vmul.f32 %v500_v51, %v494_v50 }
 0x179   : > { %600 = vmatprep.mubr.f32.mxu1 %v502_v53 }
 0x17a   : > { %601 = vmatmul.mubr.f32.vlgmr.msra.gmra.mrb[0].mxu1 %v501_v54 }
 0x24d   : > { %v830_v55 = vpop.f32.mrb[0].mxu1 }
 0x24e   : > { %v831_v56 = vpop.f32.mrb[1].mxu1 }
 0x24f   : > { %v832_v58 = vadd.f32 %v831_v56, %v830_v55 }
 0x251   : > { %v619_v59 = vadd.f32 %v832_v58, %v791_v57 }
 0x253   : > { %v620_v60 = vadd.f32 %v619_v59, %v1416_v3  ;;  %v793_v3 = vld [vmem:[%s1493_s6] ss:$0 sm:$0xff] }
 0x255   : > { %621 = vadd.xlane.f32.xlu0 %v620_v60 }
 0x2e2   : > { %v622_v61 = vpop.xlane.xlu0 %621 }
 0x2e3   : > { %v624_v62 = vmul.f32 0.0078125, %v622_v61 }
 0x2e5   : > { %v625_v63 = vsub.f32 %v620_v60, %v624_v62 }
 0x2e7   : > { %v626_v0 = vmul.f32 %v625_v63, %v625_v63 }
 0x2e9   : > { %627 = vadd.xlane.f32.xlu0 %v626_v0 }
 0x376   : > { %v628_v1 = vpop.xlane.xlu0 %627 }
 0x377   : > { %v629_v2 = vmul.f32 0.0078125, %v628_v1 }
 0x379   : > { %v630_v4 = vadd.f32 1e-12, %v629_v2 }
 0x37b   : > { %989 = vrsqrt.f32 %v630_v4 }
 0x385   : > { %v990_v5 = vpop.eup %989 }
 0x386   : > { %v632_v7 = vmul.f32 %v990_v5, %v625_v63 }
 0x388   : > { %v640_v8 = vmul.f32 %v792_v6, %v632_v7 }
 0x38a   : > { %v648_v9 = vadd.f32 %v793_v3, %v640_v8 }
 0x38c   : > { %649 = vst [vmem:[%s364_s16] sm:$0xff] %v648_v9 }
 0x38d   : > { %1090 = shalt.err (!%p1087_p11)
}
 0x38e   : > { %s1091_s21 = scalar_lea.hbm %s1438_s9, 128  ;;  %s1095_s19 = scalar_lea.hbm %s1494_s7, 256 }
 0x38f   : > { %p1092_p0 = scmp.ne.s32.totalorder %s1438_s9, %s1091_s21  ;;  %p1096_p6 = scmp.lt.u32.totalorder %s1438_s9, %s1494_s7 }
 0x390   : > { %p1097_p7 = scmp.lt.u32.totalorder %s1095_s19, %s1091_s21  ;;  %p1099_p8 = scmp.lt.u32.totalorder %s1091_s21, %s1438_s9 }
 0x391   : > { %p1093_p4 = pnand %p1092_p0, %p1513_p12 }
 0x392   : > { %p1098_p2 = por %p1097_p7, %p1096_p6 }
 0x393   : > { %p1094_p13 = pneg %p1093_p4 }
 0x394   : > { %p1100_p1 = por %p1099_p8, %p1098_p2 }
 0x396   : > { %p1101_p10 = pnand %p1100_p1, %p1094_p13 }
 0x398   : > { %1104 = shalt.err (!%p1101_p10)
}
 0x399   : > { %907 = dma.vmem_to_hbm [thread:$0]  (%p1513_p12), %s1440_s18, 128, %s1438_s9, %s651_s11  }
 0x39a PF: > { %s1514_s16 = sld [smem:[#allocation13_spill]]  ;;  %s1515_s14 = sld [smem:[#allocation14_spill]] }
 0x39b   : > { %p1517_p5 = scmp.ge.s32.totalorder %s1163_s29, 2 }
 0x3a0   : > { %s676_s15 = sand.u32 1, %s1514_s16   ;;  %p1516_p3 = scmp.ne.s32.totalorder %s1515_s14, 0 }
 0x3a1   : > { %s677_s13 = scalar_lea.sflag [#allocation5], %s676_s15 }
 0x3a2   : > { %p921_p9 = pnand %p1517_p5, %p1516_p3 }
 0x3a4   : > { %1138 = dma.done.wait (!%p921_p9), %s677_s13, 128  }
 0x3a5   : > { %1140 = vsyncadd (!%p921_p9), %s677_s13, 4294967168  ;;  %s24_s29 = sadd.s32 1, %s1163_s29   ;;  %s1518_s24 = smov %s1147_s25 }
 0x3a6   : > { %p21_p11 = scmp.ge.s32.totalorder %s24_s29, 4   ;;  %s1519_s25 = smov %s1151_s26 }
 0x3a7   : > { %s1520_s26 = smov %s1356_s8  ;;  %s1521_s27 = smov %s1159_s28 }
 0x3a8   : > { %s1522_s28 = smov %s1524_s20  ;;  %23 = sbr.rel (!%p21_p11) target bundleno = 7 (0x7), region = 114 }
 0x3af   :  { %682 = vsyncpa [#allocation4], 1 }
 0x3b0   :  { %684 = vsyncpa [#allocation4 + $0x1], 1 }
 0x3b1   :  { %685 = vsyncpa [#allocation7], 1 }
 0x3b2   :  { %686 = vsyncpa [#allocation5], 1 }
 0x3b3   :  { %688 = vsyncpa [#allocation5 + $0x1], 1 }

</bundles_post_ra>
